<compile_context>
chip_gen: v5e
topology: v5e:2x2
jax: 0.10.0
libtpu: 0.0.40
codegen_flags: <defaults>
</compile_context>

<pallas_src>
import jax
import jax.numpy as jnp
from jax import lax
from jax.experimental import pallas as pl
from jax.experimental.pallas import tpu as pltpu


def dist_encoder_kernel(x1_ref, x2_ref,
                        w1_ref, b1_ref,
                        w2_ref, b2_ref,
                        w3_ref, b3_ref,
                        w4_ref, b4_ref,
                        w5t_ref,
                        out_ref):
    """One batch tile: encode both inputs in a single merged pass, emit lane-dense dist."""
    tm, _ = x1_ref.shape

    # Merge the two (tm, D) input tiles into one (2*tm, D) bf16 block so every
    # layer's weights are pushed through the MXU once per tile.
    x = jnp.concatenate(
        [x1_ref[...].astype(jnp.bfloat16), x2_ref[...].astype(jnp.bfloat16)],
        axis=0)

    def layer(h_bf16, w_ref, b_ref):
        # bf16 MXU operands, f32 accumulation; bias-add + ReLU in f32
        # (safe on v5e's f32-only VPU, fine on v6e/v7x).
        acc = jnp.dot(h_bf16, w_ref[...], preferred_element_type=jnp.float32)
        return jnp.maximum(acc + b_ref[...], 0.0)

    h = layer(x, w1_ref, b1_ref).astype(jnp.bfloat16)    # (2*tm, 256)
    h = layer(h, w2_ref, b2_ref).astype(jnp.bfloat16)    # (2*tm, 64)
    h = layer(h, w3_ref, b3_ref).astype(jnp.bfloat16)    # (2*tm, 16)
    h4 = layer(h, w4_ref, b4_ref)                        # (2*tm, 8), f32

    # Subtract BEFORE the final linear layer (bias cancels exactly); keep f32
    # for small-distance accuracy.  Halves the final-layer work vs. diffing z.
    diff_h = h4[:tm, :] - h4[tm:, :]                     # (tm, 8), f32

    # Transposed final layer: zT[l, m] = sum_k w5t[l, k] * diff_h[m, k]
    # -> (low_dim, tm): batch on lanes, so the reduction below yields a
    # lane-major (1, tm) row written with unmasked stores.
    zT = lax.dot_general(
        w5t_ref[...], diff_h,
        dimension_numbers=(((1,), (1,)), ((), ())),
        preferred_element_type=jnp.float32)

    out_ref[...] = jnp.sum(zT * zT, axis=0, keepdims=True)   # (1, tm), f32


def _round_up(x, m):
    return ((x + m - 1) // m) * m


def dist_encoder_forward(x1, x2, params, *, tm=2048):
    """params = [(w1, b1), ..., (w5, b5)] with w_i (in, out) f32, b_i (1, out) f32."""
    batch, input_dim = x1.shape
    assert x2.shape == (batch, input_dim)

    # Clamp the tile so small batches don't pad all the way up to the default tm.
    tm = max(128, min(_round_up(tm, 128), _round_up(batch, 128)))
    num_tiles = pl.cdiv(batch, tm)
    batch_p = num_tiles * tm
    pad = batch_p - batch
    if pad:  # only copy when the batch is ragged w.r.t. the tile
        x1 = jnp.pad(x1, ((0, pad), (0, 0)))
        x2 = jnp.pad(x2, ((0, pad), (0, 0)))

    x_spec = pl.BlockSpec((tm, input_dim), lambda i: (i, 0))

    def const_spec(arr):
        return pl.BlockSpec(arr.shape, lambda i: (0,) * arr.ndim)

    # Layers 1-4: weights bf16 (in, out), biases f32 (1, out).
    param_list, param_specs = [], []
    for w, b in params[:-1]:
        wq = w.astype(jnp.bfloat16)
        bf = b.reshape(1, -1).astype(jnp.float32)
        param_list += [wq, bf]
        param_specs += [const_spec(wq), const_spec(bf)]
    # Layer 5: transposed f32 weight (low_dim, 8); bias dropped (cancels in the diff).
    w5, _b5 = params[-1]
    w5t = jnp.transpose(w5).astype(jnp.float32)
    param_list.append(w5t)
    param_specs.append(const_spec(w5t))

    dims = [input_dim] + [w.shape[1] for w, _ in params]
    mm_flops = 2 * sum(dims[i] * dims[i + 1] for i in range(len(dims) - 2))
    flops = batch_p * (2 * mm_flops + 2 * dims[-2] * dims[-1])
    bytes_accessed = (2 * batch_p * input_dim * 4 + batch_p * 4
                      + sum(int(p.size) * p.dtype.itemsize for p in param_list))

    out = pl.pallas_call(
        dist_encoder_kernel,
        out_shape=jax.ShapeDtypeStruct((1, batch_p), jnp.float32),
        grid_spec=pltpu.PrefetchScalarGridSpec(
            num_scalar_prefetch=0,
            grid=(num_tiles,),
            in_specs=[x_spec, x_spec] + param_specs,
            out_specs=pl.BlockSpec((1, tm), lambda i: (0, i)),
        ),
        compiler_params=pltpu.CompilerParams(
            dimension_semantics=("parallel",),        # shards tiles across TCs on v7x
            vmem_limit_bytes=32 * 1024 * 1024,        # fits v7x; > v5e's 16 MiB default
        ),
        cost_estimate=pl.CostEstimate(
            flops=int(flops), transcendentals=0,
            bytes_accessed=int(bytes_accessed)),
    )(x1, x2, *param_list)

    return out.reshape(batch_p)[:batch]               # [batch]


def init_params(key, input_dim, low_dim):
    """Deterministic init matching nn.Linear ranges. w (in, out); b (1, out); f32."""
    dims = [input_dim, 256, 64, 16, 8, low_dim]
    params = []
    for i in range(len(dims) - 1):
        key, kw, kb = jax.random.split(key, 3)
        fan_in, fan_out = dims[i], dims[i + 1]
        bound = 1.0 / jnp.sqrt(fan_in)
        w = jax.random.uniform(kw, (fan_in, fan_out), jnp.float32, -bound, bound)
        b = jax.random.uniform(kb, (1, fan_out), jnp.float32, -bound, bound)
        params.append((w, b))
    return params


def reference_forward(x1, x2, params):
    """Pure-JAX reference mirroring the kernel's precision recipe."""
    def encode4(x):
        h = x.astype(jnp.bfloat16)
        n = len(params) - 1
        for i, (w, b) in enumerate(params[:-1]):
            a = jnp.dot(h, w.astype(jnp.bfloat16),
                        preferred_element_type=jnp.float32) + b
            a = jnp.maximum(a, 0.0)
            h = a.astype(jnp.bfloat16) if i < n - 1 else a   # layer-4 output stays f32
        return h
    w5, _ = params[-1]
    diff_h = encode4(x1) - encode4(x2)                        # (batch, 8) f32
    z = jnp.dot(diff_h, w5.astype(jnp.float32))               # (batch, low_dim) f32
    return jnp.sum(z * z, axis=1)


if __name__ == "__main__":
    input_dim = 32
    low_dim = 4
    batch = 16

    key = jax.random.PRNGKey(0)
    kp, k1, k2 = jax.random.split(key, 3)

    params = init_params(kp, input_dim, low_dim)
    x1 = jax.random.normal(k1, (batch, input_dim), jnp.float32)
    x2 = jax.random.normal(k2, (batch, input_dim), jnp.float32)

    dist = dist_encoder_forward(x1, x2, params)
    jax.block_until_ready(dist)

    ref = reference_forward(x1, x2, params)
    assert dist.shape == (batch,)
    assert jnp.allclose(dist, ref, rtol=2e-2, atol=1e-3), (dist, ref)

    print("KERNEL_OK")
</pallas_src>

<mosaic_0001>
module attributes {stable_mosaic.version = 11 : i64} {
  func.func @dist_encoder_kernel(%arg0: i32, %arg1: memref<128x32xf32, #tpu.memory_space<vmem>>, %arg2: memref<128x32xf32, #tpu.memory_space<vmem>>, %arg3: memref<32x256xbf16, #tpu.memory_space<vmem>>, %arg4: memref<1x256xf32, #tpu.memory_space<vmem>>, %arg5: memref<256x64xbf16, #tpu.memory_space<vmem>>, %arg6: memref<1x64xf32, #tpu.memory_space<vmem>>, %arg7: memref<64x16xbf16, #tpu.memory_space<vmem>>, %arg8: memref<1x16xf32, #tpu.memory_space<vmem>>, %arg9: memref<16x8xbf16, #tpu.memory_space<vmem>>, %arg10: memref<1x8xf32, #tpu.memory_space<vmem>>, %arg11: memref<4x8xf32, #tpu.memory_space<vmem>>, %arg12: memref<1x128xf32, #tpu.memory_space<vmem>>) attributes {dimension_semantics = [#tpu.dimension_semantics<parallel>], iteration_bounds = array<i64: 1>, scalar_prefetch = 0 : i64, scratch_operands = 0 : i64, tpu.core_type = #tpu.core_type<tc>, window_params = [{transform_indices = @transform_0, window_bounds = array<i64: 128, 32>}, {transform_indices = @transform_1, window_bounds = array<i64: 128, 32>}, {pipeline_mode = #tpu.pipeline_mode<synchronous>, transform_indices = @transform_2, window_bounds = array<i64: 32, 256>}, {pipeline_mode = #tpu.pipeline_mode<synchronous>, transform_indices = @transform_3, window_bounds = array<i64: 1, 256>}, {pipeline_mode = #tpu.pipeline_mode<synchronous>, transform_indices = @transform_4, window_bounds = array<i64: 256, 64>}, {pipeline_mode = #tpu.pipeline_mode<synchronous>, transform_indices = @transform_5, window_bounds = array<i64: 1, 64>}, {pipeline_mode = #tpu.pipeline_mode<synchronous>, transform_indices = @transform_6, window_bounds = array<i64: 64, 16>}, {pipeline_mode = #tpu.pipeline_mode<synchronous>, transform_indices = @transform_7, window_bounds = array<i64: 1, 16>}, {pipeline_mode = #tpu.pipeline_mode<synchronous>, transform_indices = @transform_8, window_bounds = array<i64: 16, 8>}, {pipeline_mode = #tpu.pipeline_mode<synchronous>, transform_indices = @transform_9, window_bounds = array<i64: 1, 8>}, {pipeline_mode = #tpu.pipeline_mode<synchronous>, transform_indices = @transform_10, window_bounds = array<i64: 4, 8>}, {transform_indices = @transform_11, window_bounds = array<i64: 1, 128>}]} {
    %c0 = arith.constant 0 : index
    %c0_0 = arith.constant 0 : index
    %0 = vector.load %arg1[%c0, %c0_0] : memref<128x32xf32, #tpu.memory_space<vmem>>, vector<128x32xf32>
    %1 = arith.truncf %0 : vector<128x32xf32> to vector<128x32xbf16>
    %c0_1 = arith.constant 0 : index
    %c0_2 = arith.constant 0 : index
    %2 = vector.load %arg2[%c0_1, %c0_2] : memref<128x32xf32, #tpu.memory_space<vmem>>, vector<128x32xf32>
    %3 = arith.truncf %2 : vector<128x32xf32> to vector<128x32xbf16>
    %4 = tpu.concatenate %1, %3 in 0 : vector<128x32xbf16>, vector<128x32xbf16> -> vector<256x32xbf16>
    %c0_3 = arith.constant 0 : index
    %c0_4 = arith.constant 0 : index
    %5 = vector.load %arg3[%c0_3, %c0_4] : memref<32x256xbf16, #tpu.memory_space<vmem>>, vector<32x256xbf16>
    %cst = arith.constant dense<0.000000e+00> : vector<256x256xf32>
    %6 = tpu.matmul %4, %5, %cst {dimension_numbers = #tpu.dot_dimension_numbers<[1], [0], [0], [1], [0, 0, 1, 1], [], []>} : vector<256x32xbf16>, vector<32x256xbf16>, vector<256x256xf32> -> vector<256x256xf32>
    %c0_5 = arith.constant 0 : index
    %c0_6 = arith.constant 0 : index
    %7 = vector.load %arg4[%c0_5, %c0_6] : memref<1x256xf32, #tpu.memory_space<vmem>>, vector<1x256xf32>
    %8 = vector.broadcast %7 : vector<1x256xf32> to vector<256x256xf32>
    %9 = arith.addf %6, %8 : vector<256x256xf32>
    %cst_7 = arith.constant 0.000000e+00 : f32
    %10 = vector.broadcast %cst_7 : f32 to vector<256x256xf32>
    %11 = arith.maximumf %9, %10 : vector<256x256xf32>
    %12 = arith.truncf %11 : vector<256x256xf32> to vector<256x256xbf16>
    %c0_8 = arith.constant 0 : index
    %c0_9 = arith.constant 0 : index
    %13 = vector.load %arg5[%c0_8, %c0_9] : memref<256x64xbf16, #tpu.memory_space<vmem>>, vector<256x64xbf16>
    %cst_10 = arith.constant dense<0.000000e+00> : vector<256x64xf32>
    %14 = tpu.matmul %12, %13, %cst_10 {dimension_numbers = #tpu.dot_dimension_numbers<[1], [0], [0], [1], [0, 0, 1, 1], [], []>} : vector<256x256xbf16>, vector<256x64xbf16>, vector<256x64xf32> -> vector<256x64xf32>
    %c0_11 = arith.constant 0 : index
    %c0_12 = arith.constant 0 : index
    %15 = vector.load %arg6[%c0_11, %c0_12] : memref<1x64xf32, #tpu.memory_space<vmem>>, vector<1x64xf32>
    %16 = vector.broadcast %15 : vector<1x64xf32> to vector<256x64xf32>
    %17 = arith.addf %14, %16 : vector<256x64xf32>
    %cst_13 = arith.constant 0.000000e+00 : f32
    %18 = vector.broadcast %cst_13 : f32 to vector<256x64xf32>
    %19 = arith.maximumf %17, %18 : vector<256x64xf32>
    %20 = arith.truncf %19 : vector<256x64xf32> to vector<256x64xbf16>
    %c0_14 = arith.constant 0 : index
    %c0_15 = arith.constant 0 : index
    %21 = vector.load %arg7[%c0_14, %c0_15] : memref<64x16xbf16, #tpu.memory_space<vmem>>, vector<64x16xbf16>
    %cst_16 = arith.constant dense<0.000000e+00> : vector<256x16xf32>
    %22 = tpu.matmul %20, %21, %cst_16 {dimension_numbers = #tpu.dot_dimension_numbers<[1], [0], [0], [1], [0, 0, 1, 1], [], []>} : vector<256x64xbf16>, vector<64x16xbf16>, vector<256x16xf32> -> vector<256x16xf32>
    %c0_17 = arith.constant 0 : index
    %c0_18 = arith.constant 0 : index
    %23 = vector.load %arg8[%c0_17, %c0_18] : memref<1x16xf32, #tpu.memory_space<vmem>>, vector<1x16xf32>
    %24 = vector.broadcast %23 : vector<1x16xf32> to vector<256x16xf32>
    %25 = arith.addf %22, %24 : vector<256x16xf32>
    %cst_19 = arith.constant 0.000000e+00 : f32
    %26 = vector.broadcast %cst_19 : f32 to vector<256x16xf32>
    %27 = arith.maximumf %25, %26 : vector<256x16xf32>
    %28 = arith.truncf %27 : vector<256x16xf32> to vector<256x16xbf16>
    %c0_20 = arith.constant 0 : index
    %c0_21 = arith.constant 0 : index
    %29 = vector.load %arg9[%c0_20, %c0_21] : memref<16x8xbf16, #tpu.memory_space<vmem>>, vector<16x8xbf16>
    %cst_22 = arith.constant dense<0.000000e+00> : vector<256x8xf32>
    %30 = tpu.matmul %28, %29, %cst_22 {dimension_numbers = #tpu.dot_dimension_numbers<[1], [0], [0], [1], [0, 0, 1, 1], [], []>} : vector<256x16xbf16>, vector<16x8xbf16>, vector<256x8xf32> -> vector<256x8xf32>
    %c0_23 = arith.constant 0 : index
    %c0_24 = arith.constant 0 : index
    %31 = vector.load %arg10[%c0_23, %c0_24] : memref<1x8xf32, #tpu.memory_space<vmem>>, vector<1x8xf32>
    %32 = vector.broadcast %31 : vector<1x8xf32> to vector<256x8xf32>
    %33 = arith.addf %30, %32 : vector<256x8xf32>
    %cst_25 = arith.constant 0.000000e+00 : f32
    %34 = vector.broadcast %cst_25 : f32 to vector<256x8xf32>
    %35 = arith.maximumf %33, %34 : vector<256x8xf32>
    %36 = vector.extract_strided_slice %35 {offsets = [0, 0], sizes = [128, 8], strides = [1, 1]} : vector<256x8xf32> to vector<128x8xf32>
    %37 = vector.extract_strided_slice %35 {offsets = [128, 0], sizes = [128, 8], strides = [1, 1]} : vector<256x8xf32> to vector<128x8xf32>
    %38 = arith.subf %36, %37 : vector<128x8xf32>
    %c0_26 = arith.constant 0 : index
    %c0_27 = arith.constant 0 : index
    %39 = vector.load %arg11[%c0_26, %c0_27] : memref<4x8xf32, #tpu.memory_space<vmem>>, vector<4x8xf32>
    %cst_28 = arith.constant dense<0.000000e+00> : vector<4x128xf32>
    %40 = tpu.matmul %39, %38, %cst_28 {dimension_numbers = #tpu.dot_dimension_numbers<[1], [1], [0], [0], [0, 0, 1, 0], [], []>} : vector<4x8xf32>, vector<128x8xf32>, vector<4x128xf32> -> vector<4x128xf32>
    %41 = arith.mulf %40, %40 : vector<4x128xf32>
    %cst_29 = arith.constant dense<0.000000e+00> : vector<128xf32>
    %42 = vector.multi_reduction <add>, %41, %cst_29 [0] : vector<4x128xf32> to vector<128xf32>
    %43 = vector.shape_cast %42 : vector<128xf32> to vector<1x128xf32>
    %c0_30 = arith.constant 0 : index
    %c0_31 = arith.constant 0 : index
    %44 = vector.load %arg12[%c0_30, %c0_31] : memref<1x128xf32, #tpu.memory_space<vmem>>, vector<1x128xf32>
    tpu.vector_store %arg12[%c0_30, %c0_31], %43 {strides = array<i32>} : memref<1x128xf32, #tpu.memory_space<vmem>>, vector<1x128xf32>,
    return
  }
  func.func @transform_0(%arg0: i32) -> (i32, i32) {
    %c0_i32 = arith.constant 0 : i32
    %c0_i32_0 = arith.constant 0 : i32
    return %arg0, %c0_i32 : i32, i32
  }
  func.func @transform_1(%arg0: i32) -> (i32, i32) {
    %c0_i32 = arith.constant 0 : i32
    %c0_i32_0 = arith.constant 0 : i32
    return %arg0, %c0_i32 : i32, i32
  }
  func.func @transform_2(%arg0: i32) -> (i32, i32) {
    %c0_i32 = arith.constant 0 : i32
    %c0_i32_0 = arith.constant 0 : i32
    %c0_i32_1 = arith.constant 0 : i32
    return %c0_i32, %c0_i32_0 : i32, i32
  }
  func.func @transform_3(%arg0: i32) -> (i32, i32) {
    %c0_i32 = arith.constant 0 : i32
    %c0_i32_0 = arith.constant 0 : i32
    %c0_i32_1 = arith.constant 0 : i32
    return %c0_i32, %c0_i32_0 : i32, i32
  }
  func.func @transform_4(%arg0: i32) -> (i32, i32) {
    %c0_i32 = arith.constant 0 : i32
    %c0_i32_0 = arith.constant 0 : i32
    %c0_i32_1 = arith.constant 0 : i32
    return %c0_i32, %c0_i32_0 : i32, i32
  }
  func.func @transform_5(%arg0: i32) -> (i32, i32) {
    %c0_i32 = arith.constant 0 : i32
    %c0_i32_0 = arith.constant 0 : i32
    %c0_i32_1 = arith.constant 0 : i32
    return %c0_i32, %c0_i32_0 : i32, i32
  }
  func.func @transform_6(%arg0: i32) -> (i32, i32) {
    %c0_i32 = arith.constant 0 : i32
    %c0_i32_0 = arith.constant 0 : i32
    %c0_i32_1 = arith.constant 0 : i32
    return %c0_i32, %c0_i32_0 : i32, i32
  }
  func.func @transform_7(%arg0: i32) -> (i32, i32) {
    %c0_i32 = arith.constant 0 : i32
    %c0_i32_0 = arith.constant 0 : i32
    %c0_i32_1 = arith.constant 0 : i32
    return %c0_i32, %c0_i32_0 : i32, i32
  }
  func.func @transform_8(%arg0: i32) -> (i32, i32) {
    %c0_i32 = arith.constant 0 : i32
    %c0_i32_0 = arith.constant 0 : i32
    %c0_i32_1 = arith.constant 0 : i32
    return %c0_i32, %c0_i32_0 : i32, i32
  }
  func.func @transform_9(%arg0: i32) -> (i32, i32) {
    %c0_i32 = arith.constant 0 : i32
    %c0_i32_0 = arith.constant 0 : i32
    %c0_i32_1 = arith.constant 0 : i32
    return %c0_i32, %c0_i32_0 : i32, i32
  }
  func.func @transform_10(%arg0: i32) -> (i32, i32) {
    %c0_i32 = arith.constant 0 : i32
    %c0_i32_0 = arith.constant 0 : i32
    %c0_i32_1 = arith.constant 0 : i32
    return %c0_i32, %c0_i32_0 : i32, i32
  }
  func.func @transform_11(%arg0: i32) -> (i32, i32) {
    %c0_i32 = arith.constant 0 : i32
    %c0_i32_0 = arith.constant 0 : i32
    return %c0_i32, %arg0 : i32, i32
  }
}

</mosaic_0001>

<bundles_post_ra>
// kernel: tpu_custom_call.1
= control target key start
LH: loop header
LB: loop body
LE: loop exit
PB: predicated region body
PF: predicated region fallthrough
CT: control target
= control target key end

     0   :  { %s2320_s0 = inlined_call_operand.vmem [shape: f32[128,32], index: 0, kind: input, shape index: {}]   ;;  %s2321_s1 = inlined_call_operand.vmem [shape: f32[128,32], index: 1, kind: input, shape index: {}]   ;;  %s2322_s2 = inlined_call_operand.vmem [shape: bf16[32,256], index: 2, kind: input, shape index: {}]   ;;  %s2323_s3 = inlined_call_operand.vmem [shape: f32[1,256], index: 3, kind: input, shape index: {}]   ;;  %s2324_s4 = inlined_call_operand.vmem [shape: bf16[256,64], index: 4, kind: input, shape index: {}]   ;;  %s2325_s5 = inlined_call_operand.vmem [shape: f32[1,64], index: 5, kind: input, shape index: {}]   ;;  %s2326_s6 = inlined_call_operand.vmem [shape: bf16[64,16], index: 6, kind: input, shape index: {}]   ;;  %s2327_s7 = inlined_call_operand.vmem [shape: f32[1,16], index: 7, kind: input, shape index: {}]   ;;  %s2328_s8 = inlined_call_operand.vmem [shape: bf16[16,8], index: 8, kind: input, shape index: {}]   ;;  %s2329_s9 = inlined_call_operand.vmem [shape: f32[1,8], index: 9, kind: input, shape index: {}]   ;;  %s2330_s10 = inlined_call_operand.vmem [shape: f32[4,8], index: 10, kind: input, shape index: {}]   ;;  %s2331_s11 = inlined_call_operand.hbm [shape: f32[1,128], index: 11, kind: output, shape index: {}]  }
   0x1   :  { %v1424_v0 = vld [vmem:[%s2322_s2 + $0x10] sm:$0xf]  ;;  %v1598_v1 = vld [vmem:[%s2322_s2 + $0x14] sm:$0xf0]  ;;  %v1597_v2 = vld [vmem:[%s2322_s2 + $0x14] sm:$0xf] }
   0x2   :  { %v1425_v3 = vor.u32 %v1598_v1, %v1424_v0  ;;  %v1426_v4 = vld [vmem:[%s2322_s2 + $0x18] sm:$0xf0]  ;;  %v1416_v5 = vld [vmem:[%s2322_s2] sm:$0xf]  ;;  %v1596_v6 = vld [vmem:[%s2322_s2 + $0x4] sm:$0xf0] }
   0x3   :  { %v1429_v7 = vor.u32 %v1597_v2, %v1426_v4  ;;  %v1595_v8 = vld [vmem:[%s2322_s2 + $0x4] sm:$0xf]  ;;  %v1418_v9 = vld [vmem:[%s2322_s2 + $0x8] sm:$0xf0]  ;;  %v1417_v11 = vor.u32 %v1596_v6, %v1416_v5  ;;  %v74_v16 = vld [vmem:[%s2321_s1 + $0x10] sm:$0xff] }
   0x4   :  { %v40_v10 = vld [vmem:[%s2320_s0] sm:$0xff]  ;;  %269 = vmatpush.bf16.msra.mxu0 %v1425_v3  ;;  %v41_v12 = vld [vmem:[%s2320_s0 + $0x8] sm:$0xff]  ;;  %1620 = vmatpush.bf16.msra.mxu3 %v1425_v3  ;;  %v1421_v14 = vor.u32 %v1595_v8, %v1418_v9  ;;  %v75_v17 = vld [vmem:[%s2321_s1 + $0x18] sm:$0xff]  ;;  %v90_v19 = vpack.c.bf16 %v74_v16, %v74_v16 }
   0x5   :  { %v56_v13 = vpack.c.bf16 %v40_v10, %v40_v10  ;;  %358 = vmatpush.bf16.msra.mxu1 %v1429_v7  ;;  %v57_v15 = vpack.c.bf16 %v41_v12, %v41_v12  ;;  %1622 = vmatpush.bf16.msra.mxu2 %v1429_v7  ;;  %v91_v20 = vpack.c.bf16 %v75_v17, %v75_v17 }
   0x7   :  { %v120_v18 = vunpack.c.l.b16 %v56_v13  ;;  %v121_v21 = vunpack.c.l.b16 %v57_v15 }
   0x8   :  { %16 = vsyncpa [#allocation3], 0  ;;  %270 = vmatpush.bf16.msra.mxu0 %v1417_v11  ;;  %vm214_vm0 = vcmask 261120   ;;  %1621 = vmatpush.bf16.msra.mxu3 %v1417_v11  ;;  %v162_v22 = vunpack.c.l.b16 %v90_v19  ;;  %v163_v23 = vunpack.c.l.b16 %v91_v20  ;;  %v42_v26 = vld [vmem:[%s2320_s0 + $0x10] sm:$0xff]  ;;  %v43_v27 = vld [vmem:[%s2320_s0 + $0x18] sm:$0xff]  ;;  %vm931_vm1 = vcmask 523264  }
   0x9   :  { %359 = vmatpush.bf16.msra.mxu1 %v1421_v14  ;;  %v136_v24 = vpack.c.b16 %v121_v21, %v120_v18  ;;  %1623 = vmatpush.bf16.msra.mxu2 %v1421_v14  ;;  %v76_v28 = vld [vmem:[%s2321_s1 + $0x20] sm:$0xff]  ;;  %v77_v29 = vld [vmem:[%s2321_s1 + $0x28] sm:$0xff]  ;;  %v58_v30 = vpack.c.bf16 %v42_v26, %v42_v26  ;;  %v59_v31 = vpack.c.bf16 %v43_v27, %v43_v27  ;;  %v78_v42 = vld [vmem:[%s2321_s1 + $0x30] sm:$0xff]  ;;  %vm1129_vm2 = vcmask 130048   ;;  %s1654_s20 = smov [#allocation2]   ;;  %s1405_s23 = sshll.u32 %s2331_s11, 4  ;;  %s1406_s23 = int_to_ptr.hbm [resolvable:$true] %s1405_s23 }
   0xa   :  { %v177_v25 = vpack.c.b16 %v163_v23, %v162_v22  ;;  %v92_v32 = vpack.c.bf16 %v76_v28, %v76_v28  ;;  %v93_v33 = vpack.c.bf16 %v77_v29, %v77_v29  ;;  %v44_v40 = vld [vmem:[%s2320_s0 + $0x20] sm:$0xff]  ;;  %v45_v41 = vld [vmem:[%s2320_s0 + $0x28] sm:$0xff]  ;;  %v79_v43 = vld [vmem:[%s2321_s1 + $0x38] sm:$0xff]  ;;  %v94_v46 = vpack.c.bf16 %v78_v42, %v78_v42 }
   0xb   :  { %1430 = vmatmul.msk.bf16.vlgmr.msra.gmra.mxu0 %vm214_vm0, %v136_v24  ;;  %v122_v34 = vunpack.c.l.b16 %v58_v30  ;;  %v123_v35 = vunpack.c.l.b16 %v59_v31  ;;  %v60_v44 = vpack.c.bf16 %v44_v40, %v44_v40  ;;  %v61_v45 = vpack.c.bf16 %v45_v41, %v45_v41  ;;  %v46_v54 = vld [vmem:[%s2320_s0 + $0x30] sm:$0xff]  ;;  %v47_v55 = vld [vmem:[%s2320_s0 + $0x38] sm:$0xff]  ;;  %v80_v56 = vld [vmem:[%s2321_s1 + $0x40] sm:$0xff] }
   0xc   :  { %1446 = vmatmul.msk.bf16.vlgmr.msra.gmra.mxu1 %vm214_vm0, %v136_v24  ;;  %1455 = vmatmul.msk.bf16.vlgmr.msra.gmra.mxu2 %vm214_vm0, %v177_v25  ;;  %v164_v36 = vunpack.c.l.b16 %v92_v32  ;;  %v165_v37 = vunpack.c.l.b16 %v93_v33  ;;  %v95_v47 = vpack.c.bf16 %v79_v43, %v79_v43  ;;  %v166_v50 = vunpack.c.l.b16 %v94_v46  ;;  %v81_v57 = vld [vmem:[%s2321_s1 + $0x48] sm:$0xff]  ;;  %v48_v4 = vld [vmem:[%s2320_s0 + $0x40] sm:$0xff]  ;;  %v82_v6 = vld [vmem:[%s2321_s1 + $0x50] sm:$0xff] }
   0xd   :  { %1439 = vmatmul.msk.bf16.vlgmr.msra.gmra.mxu3 %vm214_vm0, %v177_v25  ;;  %v137_v38 = vpack.c.b16 %v123_v35, %v122_v34  ;;  %v124_v48 = vunpack.c.l.b16 %v60_v44  ;;  %v125_v49 = vunpack.c.l.b16 %v61_v45  ;;  %v62_v58 = vpack.c.bf16 %v46_v54, %v46_v54  ;;  %v49_v5 = vld [vmem:[%s2320_s0 + $0x48] sm:$0xff]  ;;  %v83_v7 = vld [vmem:[%s2321_s1 + $0x58] sm:$0xff]  ;;  %v50_v18 = vld [vmem:[%s2320_s0 + $0x50] sm:$0xff] }
   0xe   :  { %v178_v39 = vpack.c.b16 %v165_v37, %v164_v36  ;;  %v167_v51 = vunpack.c.l.b16 %v95_v47  ;;  %v63_v59 = vpack.c.bf16 %v47_v55, %v47_v55  ;;  %v96_v60 = vpack.c.bf16 %v80_v56, %v80_v56  ;;  %v51_v19 = vld [vmem:[%s2320_s0 + $0x58] sm:$0xff]  ;;  %v84_v22 = vld [vmem:[%s2321_s1 + $0x60] sm:$0xff]  ;;  %v85_v23 = vld [vmem:[%s2321_s1 + $0x68] sm:$0xff] }
   0xf   :  { %v138_v52 = vpack.c.b16 %v125_v49, %v124_v48  ;;  %v97_v61 = vpack.c.bf16 %v81_v57, %v81_v57  ;;  %v126_v62 = vunpack.c.l.b16 %v62_v58  ;;  %v64_v8 = vpack.c.bf16 %v48_v4, %v48_v4  ;;  %v1606_v20 = vld [vmem:[%s2324_s4 + $0x38] sm:$0xff]  ;;  %v1605_v34 = vld [vmem:[%s2324_s4 + $0x30] sm:$0xff]  ;;  %v52_v36 = vld [vmem:[%s2320_s0 + $0x60] sm:$0xff] }
  0x10   :  { %v179_v53 = vpack.c.b16 %v167_v51, %v166_v50  ;;  %v127_v63 = vunpack.c.l.b16 %v63_v59  ;;  %v168_v0 = vunpack.c.l.b16 %v96_v60  ;;  %v65_v9 = vpack.c.bf16 %v49_v5, %v49_v5  ;;  %v1614_v21 = vld [vmem:[%s2324_s4 + $0x78] sm:$0xff]  ;;  %669 = vmatpush.bf16.msrb.mxu2 %v1606_v20  ;;  %v1613_v35 = vld [vmem:[%s2324_s4 + $0x70] sm:$0xff]  ;;  %v53_v37 = vld [vmem:[%s2320_s0 + $0x68] sm:$0xff] }
  0x11   :  { %v169_v1 = vunpack.c.l.b16 %v97_v61  ;;  %v98_v10 = vpack.c.bf16 %v82_v6, %v82_v6  ;;  %v99_v11 = vpack.c.bf16 %v83_v7, %v83_v7  ;;  %v128_v12 = vunpack.c.l.b16 %v64_v8  ;;  %758 = vmatpush.bf16.msrb.mxu3 %v1614_v21  ;;  %v1604_v40 = vld [vmem:[%s2324_s4 + $0x28] sm:$0xff]  ;;  %v1603_v46 = vld [vmem:[%s2324_s4 + $0x20] sm:$0xff]  ;;  %v1610_v54 = vld [vmem:[%s2324_s4 + $0x58] sm:$0xff] }
  0x12   :  { %v139_v2 = vpack.c.b16 %v127_v63, %v126_v62  ;;  %v129_v13 = vunpack.c.l.b16 %v65_v9  ;;  %v66_v24 = vpack.c.bf16 %v50_v18, %v50_v18  ;;  %v67_v25 = vpack.c.bf16 %v51_v19, %v51_v19  ;;  %v1612_v41 = vld [vmem:[%s2324_s4 + $0x68] sm:$0xff]  ;;  %v1611_v47 = vld [vmem:[%s2324_s4 + $0x60] sm:$0xff]  ;;  %v1601_v56 = vld [vmem:[%s2324_s4 + $0x10] sm:$0xff] }
  0x13   :  { %v180_v3 = vpack.c.b16 %v169_v1, %v168_v0  ;;  %v170_v14 = vunpack.c.l.b16 %v98_v10  ;;  %v171_v15 = vunpack.c.l.b16 %v99_v11  ;;  %v100_v26 = vpack.c.bf16 %v84_v22, %v84_v22  ;;  %v1609_v57 = vld [vmem:[%s2324_s4 + $0x50] sm:$0xff]  ;;  %v55_v59 = vld [vmem:[%s2320_s0 + $0x78] sm:$0xff]  ;;  %v1600_v62 = vld [vmem:[%s2324_s4 + $0x8] sm:$0xff] }
  0x14   :  { %v140_v16 = vpack.c.b16 %v129_v13, %v128_v12  ;;  %v101_v27 = vpack.c.bf16 %v85_v23, %v85_v23  ;;  %v130_v28 = vunpack.c.l.b16 %v66_v24  ;;  %v131_v29 = vunpack.c.l.b16 %v67_v25  ;;  %670 = vmatpush.bf16.msrb.mxu2 %v1605_v34  ;;  %v54_v58 = vld [vmem:[%s2320_s0 + $0x70] sm:$0xff]  ;;  %v1608_v63 = vld [vmem:[%s2324_s4 + $0x48] sm:$0xff]  ;;  %v72_v5 = vld [vmem:[%s2321_s1] sm:$0xff]  ;;  %s1403_s0 = sshll.u32 %s1654_s20, 4  ;;  %s1404_s0 = int_to_ptr.vmem [resolvable:$true] %s1403_s0 }
  0x15   :  { %v181_v17 = vpack.c.b16 %v171_v15, %v170_v14  ;;  %v172_v30 = vunpack.c.l.b16 %v100_v26  ;;  %759 = vmatpush.bf16.msrb.mxu3 %v1613_v35  ;;  %v68_v42 = vpack.c.bf16 %v52_v36, %v52_v36  ;;  %v69_v43 = vpack.c.bf16 %v53_v37, %v53_v37  ;;  %v73_v6 = vld [vmem:[%s2321_s1 + $0x8] sm:$0xff]  ;;  %v188_v12 = vld [vmem:[%s2323_s3] sm:$0x3] }
  0x16   :  { %v173_v31 = vunpack.c.l.b16 %v101_v27  ;;  %v141_v32 = vpack.c.b16 %v131_v29, %v130_v28  ;;  %v70_v60 = vpack.c.bf16 %v54_v58, %v54_v58  ;;  %v71_v61 = vpack.c.bf16 %v55_v59, %v55_v59 }
  0x17   :  { %v132_v48 = vunpack.c.l.b16 %v68_v42  ;;  %v133_v49 = vunpack.c.l.b16 %v69_v43  ;;  %v88_v7 = vpack.c.bf16 %v72_v5, %v72_v5  ;;  %v89_v8 = vpack.c.bf16 %v73_v6, %v73_v6 }
  0x18   :  { %v182_v33 = vpack.c.b16 %v173_v31, %v172_v30  ;;  %671 = vmatpush.bf16.msrb.mxu2 %v1604_v40  ;;  %v134_v0 = vunpack.c.l.b16 %v70_v60  ;;  %v135_v1 = vunpack.c.l.b16 %v71_v61  ;;  %v1916_v15 = vperm.slane %v188_v12, 0 }
  0x19   :  { %760 = vmatpush.bf16.msrb.mxu3 %v1612_v41  ;;  %v160_v9 = vunpack.c.l.b16 %v88_v7  ;;  %v161_v10 = vunpack.c.l.b16 %v89_v8  ;;  %vm1316_vm3 = vcmask 64512   ;;  %vm1389_vm4 = vcmask 1043456  }
  0x1a   :  { %v143_v4 = vpack.c.b16 %v135_v1, %v134_v0 }
  0x1b   :  { %1431 = vmatmul.msk.bf16.gmra.mxu0 %vm214_vm0, %v137_v38  ;;  %v176_v11 = vpack.c.b16 %v161_v10, %v160_v9 }
  0x1c   :  { %1447 = vmatmul.msk.bf16.gmra.mxu1 %vm214_vm0, %v137_v38  ;;  %1456 = vmatmul.msk.bf16.gmra.mxu2 %vm214_vm0, %v178_v39  ;;  %v86_v38 = vld [vmem:[%s2321_s1 + $0x70] sm:$0xff] }
  0x1d   :  { %1440 = vmatmul.msk.bf16.gmra.mxu3 %vm214_vm0, %v178_v39  ;;  %v87_v39 = vld [vmem:[%s2321_s1 + $0x78] sm:$0xff]  ;;  %v102_v44 = vpack.c.bf16 %v86_v38, %v86_v38  ;;  %672 = vmatpush.bf16.msrb.mxu2 %v1603_v46 }
  0x1e   :  { %v103_v45 = vpack.c.bf16 %v87_v39, %v87_v39  ;;  %761 = vmatpush.bf16.msrb.mxu3 %v1611_v47 }
  0x1f   :  { %v174_v50 = vunpack.c.l.b16 %v102_v44 }
  0x20   :  { %v175_v51 = vunpack.c.l.b16 %v103_v45 }
  0x22   :  { %v183_v55 = vpack.c.b16 %v175_v51, %v174_v50  ;;  %762 = vmatpush.bf16.msrb.mxu3 %v1610_v54 }
  0x26   :  { %763 = vmatpush.bf16.msrb.mxu3 %v1609_v57 }
  0x2a   :  { %764 = vmatpush.bf16.msrb.mxu3 %v1608_v63 }
  0x2b   :  { %1432 = vmatmul.msk.bf16.gmra.mxu0 %vm214_vm0, %v138_v52 }
  0x2c   :  { %1448 = vmatmul.msk.bf16.gmra.mxu1 %vm214_vm0, %v138_v52  ;;  %1457 = vmatmul.msk.bf16.gmra.mxu2 %vm214_vm0, %v179_v53  ;;  %v142_v52 = vpack.c.b16 %v133_v49, %v132_v48 }
  0x2d   :  { %1441 = vmatmul.msk.bf16.gmra.mxu3 %vm214_vm0, %v179_v53  ;;  %v1602_v53 = vld [vmem:[%s2324_s4 + $0x18] sm:$0xff] }
  0x2e   :  { %673 = vmatpush.bf16.msrb.mxu2 %v1602_v53 }
  0x32   :  { %674 = vmatpush.bf16.msrb.mxu2 %v1601_v56 }
  0x36   :  { %675 = vmatpush.bf16.msrb.mxu2 %v1600_v62 }
  0x3b   :  { %1433 = vmatmul.msk.bf16.gmra.mxu0 %vm214_vm0, %v139_v2 }
  0x3c   :  { %1449 = vmatmul.msk.bf16.gmra.mxu1 %vm214_vm0, %v139_v2  ;;  %1458 = vmatmul.msk.bf16.gmra.mxu2 %vm214_vm0, %v180_v3  ;;  %v1599_v2 = vld [vmem:[%s2324_s4] sm:$0xff] }
  0x3d   :  { %1442 = vmatmul.msk.bf16.gmra.mxu3 %vm214_vm0, %v180_v3  ;;  %v1607_v3 = vld [vmem:[%s2324_s4 + $0x40] sm:$0xff]  ;;  %676 = vmatpush.bf16.msrb.mxu2 %v1599_v2 }
  0x3e   :  { %765 = vmatpush.bf16.msrb.mxu3 %v1607_v3 }
  0x4b   :  { %1434 = vmatmul.msk.bf16.gmra.mxu0 %vm214_vm0, %v140_v16 }
  0x4c   :  { %1450 = vmatmul.msk.bf16.gmra.mxu1 %vm214_vm0, %v140_v16  ;;  %1459 = vmatmul.msk.bf16.gmra.mxu2 %vm214_vm0, %v181_v17  ;;  %v1919_v16 = vperm.slane %v188_v12, 1 }
  0x4d   :  { %1443 = vmatmul.msk.bf16.gmra.mxu3 %vm214_vm0, %v181_v17 }
  0x5b   :  { %1435 = vmatmul.msk.bf16.gmra.mxu0 %vm214_vm0, %v141_v32 }
  0x5c   :  { %1451 = vmatmul.msk.bf16.gmra.mxu1 %vm214_vm0, %v141_v32  ;;  %1460 = vmatmul.msk.bf16.gmra.mxu2 %vm214_vm0, %v182_v33 }
  0x5d   :  { %1444 = vmatmul.msk.bf16.gmra.mxu3 %vm214_vm0, %v182_v33 }
  0x6b   :  { %1436 = vmatmul.msk.bf16.gmra.mxu0 %vm214_vm0, %v142_v52 }
  0x6c   :  { %1452 = vmatmul.msk.bf16.gmra.mxu1 %vm214_vm0, %v142_v52  ;;  %1461 = vmatmul.msk.bf16.gmra.mxu2 %vm214_vm0, %v183_v55 }
  0x6d   :  { %1445 = vmatmul.msk.bf16.gmra.mxu3 %vm214_vm0, %v183_v55 }
  0x7b   :  { %1437 = vmatmul.msk.bf16.gmra.mxu0 %vm214_vm0, %v143_v4 }
  0x7c   :  { %1453 = vmatmul.msk.bf16.gmra.mxu1 %vm214_vm0, %v143_v4 }
  0x88   :  { %v272_v13 = vpop.f32.mrf.mxu0 }
  0x89   :  { %v361_v14 = vpop.f32.mrf.mxu1  ;;  %v273_v17 = vadd.f32 %v272_v13, %v1916_v15 }
  0x8a   :  { %v362_v18 = vadd.f32 %v361_v14, %v1919_v16 }
  0x8b   :  { %1438 = vmatmul.msk.bf16.gmra.mxu0 %vm214_vm0, %v176_v11  ;;  %v441_v25 = vmax.f32 %v273_v17, 0.0 }
  0x8c   :  { %1454 = vmatmul.msk.bf16.gmra.mxu1 %vm214_vm0, %v176_v11  ;;  %v442_v27 = vmax.f32 %v362_v18, 0.0 }
  0x8f   :  { %v1924_v20 = vpop.f32.mrf.mxu2 }
  0x90   :  { %v274_v19 = vpop.f32.mrf.mxu0  ;;  %v1927_v23 = vpop.f32.mrf.mxu3 }
  0x91   :  { %v275_v21 = vadd.f32 %v274_v19, %v1916_v15  ;;  %v363_v22 = vpop.f32.mrf.mxu1 }
  0x92   :  { %v364_v24 = vadd.f32 %v363_v22, %v1919_v16 }
  0x93   :  { %v443_v26 = vmax.f32 %v275_v21, 0.0 }
  0x94   :  { %v444_v28 = vmax.f32 %v364_v24, 0.0 }
  0x95   :  { %v505_v29 = vpack.c.bf16 %v443_v26, %v441_v25 }
  0x96   :  { %v506_v30 = vpack.c.bf16 %v444_v28, %v442_v27 }
  0x97   :  { %677 = vmatmul.bf16.vlgmr.msrb.gmra.mxu2 %v505_v29  ;;  %v1930_v33 = vpop.f32.mrf.mxu2 }
  0x98   :  { %766 = vmatmul.bf16.vlgmr.msrb.gmra.mxu3 %v506_v30  ;;  %v277_v31 = vpop.f32.mrf.mxu0  ;;  %v1932_v34 = vpop.f32.mrf.mxu3 }
  0x99   :  { %v366_v32 = vpop.f32.mrf.mxu1  ;;  %v278_v35 = vadd.f32 %v277_v31, %v1916_v15 }
  0x9a   :  { %v367_v36 = vadd.f32 %v366_v32, %v1919_v16 }
  0x9b   :  { %v445_v41 = vmax.f32 %v278_v35, 0.0 }
  0x9c   :  { %v446_v43 = vmax.f32 %v367_v36, 0.0 }
  0x9f   :  { %v1938_v45 = vpop.f32.mrf.mxu2 }
  0xa0   :  { %v279_v37 = vpop.f32.mrf.mxu0  ;;  %v1940_v47 = vpop.f32.mrf.mxu3 }
  0xa1   :  { %v280_v38 = vadd.f32 %v279_v37, %v1916_v15  ;;  %v368_v39 = vpop.f32.mrf.mxu1 }
  0xa2   :  { %v369_v40 = vadd.f32 %v368_v39, %v1919_v16 }
  0xa3   :  { %v447_v42 = vmax.f32 %v280_v38, 0.0 }
  0xa4   :  { %v448_v44 = vmax.f32 %v369_v40, 0.0 }
  0xa5   :  { %v507_v46 = vpack.c.bf16 %v447_v42, %v445_v41 }
  0xa6   :  { %v508_v48 = vpack.c.bf16 %v448_v44, %v446_v43 }
  0xa7   :  { %682 = vmatmul.bf16.gmra.mxu2 %v507_v46  ;;  %v1942_v51 = vpop.f32.mrf.mxu2 }
  0xa8   :  { %771 = vmatmul.bf16.gmra.mxu3 %v508_v48  ;;  %v282_v49 = vpop.f32.mrf.mxu0  ;;  %v1945_v53 = vpop.f32.mrf.mxu3 }
  0xa9   :  { %v371_v50 = vpop.f32.mrf.mxu1  ;;  %v283_v52 = vadd.f32 %v282_v49, %v1916_v15 }
  0xaa   :  { %v372_v54 = vadd.f32 %v371_v50, %v1919_v16 }
  0xab   :  { %v449_v59 = vmax.f32 %v283_v52, 0.0 }
  0xac   :  { %v450_v61 = vmax.f32 %v372_v54, 0.0 }
  0xaf   :  { %v1950_v2 = vpop.f32.mrf.mxu2 }
  0xb0   :  { %v284_v55 = vpop.f32.mrf.mxu0  ;;  %v1952_v4 = vpop.f32.mrf.mxu3 }
  0xb1   :  { %v285_v56 = vadd.f32 %v284_v55, %v1916_v15  ;;  %v373_v57 = vpop.f32.mrf.mxu1 }
  0xb2   :  { %v374_v58 = vadd.f32 %v373_v57, %v1919_v16 }
  0xb3   :  { %v451_v60 = vmax.f32 %v285_v56, 0.0 }
  0xb4   :  { %v452_v62 = vmax.f32 %v374_v58, 0.0 }
  0xb5   :  { %v509_v63 = vpack.c.bf16 %v451_v60, %v449_v59 }
  0xb6   :  { %v510_v0 = vpack.c.bf16 %v452_v62, %v450_v61 }
  0xb7   :  { %687 = vmatmul.bf16.gmra.mxu2 %v509_v63  ;;  %v1958_v11 = vpop.f32.mrf.mxu2 }
  0xb8   :  { %776 = vmatmul.bf16.gmra.mxu3 %v510_v0  ;;  %v287_v1 = vpop.f32.mrf.mxu0  ;;  %v1960_v14 = vpop.f32.mrf.mxu3 }
  0xb9   :  { %v376_v3 = vpop.f32.mrf.mxu1  ;;  %v288_v5 = vadd.f32 %v287_v1, %v1916_v15 }
  0xba   :  { %v377_v6 = vadd.f32 %v376_v3, %v1919_v16 }
  0xbb   :  { %v453_v12 = vmax.f32 %v288_v5, 0.0 }
  0xbc   :  { %v454_v17 = vmax.f32 %v377_v6, 0.0 }
  0xbf   :  { %v1962_v25 = vpop.f32.mrf.mxu2 }
  0xc0   :  { %v289_v7 = vpop.f32.mrf.mxu0  ;;  %v1964_v26 = vpop.f32.mrf.mxu3 }
  0xc1   :  { %v290_v8 = vadd.f32 %v289_v7, %v1916_v15  ;;  %v378_v9 = vpop.f32.mrf.mxu1 }
  0xc2   :  { %v379_v10 = vadd.f32 %v378_v9, %v1919_v16 }
  0xc3   :  { %v455_v13 = vmax.f32 %v290_v8, 0.0 }
  0xc4   :  { %v456_v18 = vmax.f32 %v379_v10, 0.0 }
  0xc5   :  { %v511_v19 = vpack.c.bf16 %v455_v13, %v453_v12 }
  0xc6   :  { %v512_v21 = vpack.c.bf16 %v456_v18, %v454_v17 }
  0xc7   :  { %692 = vmatmul.bf16.gmra.mxu2 %v511_v19  ;;  %v1970_v41 = vpop.f32.mrf.mxu2 }
  0xc8   :  { %781 = vmatmul.bf16.gmra.mxu3 %v512_v21  ;;  %v292_v22 = vpop.f32.mrf.mxu0  ;;  %v1972_v42 = vpop.f32.mrf.mxu3 }
  0xc9   :  { %v381_v24 = vpop.f32.mrf.mxu1  ;;  %v293_v27 = vadd.f32 %v292_v22, %v1916_v15 }
  0xca   :  { %v382_v28 = vadd.f32 %v381_v24, %v1919_v16 }
  0xcb   :  { %v457_v35 = vmax.f32 %v293_v27, 0.0 }
  0xcc   :  { %v458_v37 = vmax.f32 %v382_v28, 0.0 }
  0xcf   :  { %v1976_v50 = vpop.f32.mrf.mxu2 }
  0xd0   :  { %v294_v29 = vpop.f32.mrf.mxu0  ;;  %v1979_v55 = vpop.f32.mrf.mxu3 }
  0xd1   :  { %v295_v30 = vadd.f32 %v294_v29, %v1916_v15  ;;  %v383_v31 = vpop.f32.mrf.mxu1  ;;  %v1618_v29 = vld [vmem:[%s2326_s6 + $0x18] sm:$0xff] }
  0xd2   :  { %v384_v32 = vadd.f32 %v383_v31, %v1919_v16  ;;  %984 = vmatpush.bf16.msrb.mxu0 %v1618_v29  ;;  %v320_v29 = vadd.f32 %v1932_v34, %v1916_v15 }
  0xd3   :  { %v459_v36 = vmax.f32 %v295_v30, 0.0 }
  0xd4   :  { %v460_v38 = vmax.f32 %v384_v32, 0.0 }
  0xd5   :  { %v513_v39 = vpack.c.bf16 %v459_v36, %v457_v35  ;;  %v1617_v35 = vld [vmem:[%s2326_s6 + $0x10] sm:$0xff] }
  0xd6   :  { %v514_v40 = vpack.c.bf16 %v460_v38, %v458_v37  ;;  %985 = vmatpush.bf16.msrb.mxu0 %v1617_v35  ;;  %v409_v35 = vadd.f32 %v1930_v33, %v1919_v16 }
  0xd7   :  { %697 = vmatmul.bf16.gmra.mxu2 %v513_v39  ;;  %v1982_v1 = vpop.f32.mrf.mxu2 }
  0xd8   :  { %786 = vmatmul.bf16.gmra.mxu3 %v514_v40  ;;  %v297_v43 = vpop.f32.mrf.mxu0  ;;  %v1984_v3 = vpop.f32.mrf.mxu3 }
  0xd9   :  { %v386_v44 = vpop.f32.mrf.mxu1  ;;  %v298_v46 = vadd.f32 %v297_v43, %v1916_v15 }
  0xda   :  { %v387_v48 = vadd.f32 %v386_v44, %v1919_v16 }
  0xdb   :  { %v461_v57 = vmax.f32 %v298_v46, 0.0  ;;  %v1616_v46 = vld [vmem:[%s2326_s6 + $0x8] sm:$0xff] }
  0xdc   :  { %v462_v59 = vmax.f32 %v387_v48, 0.0  ;;  %986 = vmatpush.bf16.msrb.mxu0 %v1616_v46 }
  0xdf   :  { %v1990_v19 = vpop.f32.mrf.mxu2 }
  0xe0   :  { %v299_v49 = vpop.f32.mrf.mxu0  ;;  %v1992_v21 = vpop.f32.mrf.mxu3 }
  0xe1   :  { %v300_v52 = vadd.f32 %v299_v49, %v1916_v15  ;;  %v388_v54 = vpop.f32.mrf.mxu1 }
  0xe2   :  { %v389_v56 = vadd.f32 %v388_v54, %v1919_v16 }
  0xe3   :  { %v463_v58 = vmax.f32 %v300_v52, 0.0 }
  0xe4   :  { %v464_v60 = vmax.f32 %v389_v56, 0.0  ;;  %v1615_v56 = vld [vmem:[%s2326_s6] sm:$0xff] }
  0xe5   :  { %v515_v61 = vpack.c.bf16 %v463_v58, %v461_v57  ;;  %987 = vmatpush.bf16.msrb.mxu0 %v1615_v56 }
  0xe6   :  { %v516_v62 = vpack.c.bf16 %v464_v60, %v462_v59 }
  0xe7   :  { %702 = vmatmul.bf16.gmra.mxu2 %v515_v61  ;;  %v1997_v30 = vpop.f32.mrf.mxu2 }
  0xe8   :  { %791 = vmatmul.bf16.gmra.mxu3 %v516_v62  ;;  %v302_v63 = vpop.f32.mrf.mxu0  ;;  %v2000_v32 = vpop.f32.mrf.mxu3 }
  0xe9   :  { %v391_v0 = vpop.f32.mrf.mxu1  ;;  %v303_v5 = vadd.f32 %v302_v63, %v1916_v15 }
  0xea   :  { %v392_v6 = vadd.f32 %v391_v0, %v1919_v16 }
  0xeb   :  { %v465_v12 = vmax.f32 %v303_v5, 0.0 }
  0xec   :  { %v466_v17 = vmax.f32 %v392_v6, 0.0 }
  0xef   :  { %v2014_v57 = vpop.f32.mrf.mxu2 }
  0xf0   :  { %v304_v7 = vpop.f32.mrf.mxu0  ;;  %v2016_v59 = vpop.f32.mrf.mxu3 }
  0xf1   :  { %v305_v8 = vadd.f32 %v304_v7, %v1916_v15  ;;  %v393_v9 = vpop.f32.mrf.mxu1 }
  0xf2   :  { %v394_v10 = vadd.f32 %v393_v9, %v1919_v16 }
  0xf3   :  { %v467_v13 = vmax.f32 %v305_v8, 0.0 }
  0xf4   :  { %v468_v18 = vmax.f32 %v394_v10, 0.0 }
  0xf5   :  { %v517_v22 = vpack.c.bf16 %v467_v13, %v465_v12 }
  0xf6   :  { %v518_v24 = vpack.c.bf16 %v468_v18, %v466_v17 }
  0xf7   :  { %707 = vmatmul.bf16.gmra.mxu2 %v517_v22  ;;  %v2021_v6 = vpop.f32.mrf.mxu2 }
  0xf8   :  { %796 = vmatmul.bf16.gmra.mxu3 %v518_v24  ;;  %v307_v27 = vpop.f32.mrf.mxu0  ;;  %v2024_v9 = vpop.f32.mrf.mxu3  ;;  %v2029_v24 = vld [vmem:[%s2325_s5] ss:$0 sm:$0xff] }
  0xf9   :  { %v396_v28 = vpop.f32.mrf.mxu1  ;;  %v308_v31 = vadd.f32 %v307_v27, %v1916_v15 }
  0xfa   :  { %v397_v36 = vadd.f32 %v396_v28, %v1919_v16  ;;  %v318_v28 = vadd.f32 %v1927_v23, %v1916_v15 }
  0xfb   :  { %v469_v43 = vmax.f32 %v308_v31, 0.0  ;;  %v407_v31 = vadd.f32 %v1924_v20, %v1919_v16 }
  0xfc   :  { %v470_v48 = vmax.f32 %v397_v36, 0.0 }
 0x100   :  { %v309_v37 = vpop.f32.mrf.mxu0 }
 0x101   :  { %v310_v38 = vadd.f32 %v309_v37, %v1916_v15  ;;  %v398_v39 = vpop.f32.mrf.mxu1  ;;  %v477_v37 = vmax.f32 %v318_v28, 0.0 }
 0x102   :  { %v399_v40 = vadd.f32 %v398_v39, %v1919_v16  ;;  %v478_v39 = vmax.f32 %v407_v31, 0.0  ;;  %v330_v31 = vadd.f32 %v1960_v14, %v1916_v15 }
 0x103   :  { %v471_v44 = vmax.f32 %v310_v38, 0.0  ;;  %v479_v38 = vmax.f32 %v320_v29, 0.0  ;;  %v328_v29 = vadd.f32 %v1952_v4, %v1916_v15 }
 0x104   :  { %v472_v49 = vmax.f32 %v399_v40, 0.0  ;;  %v480_v40 = vmax.f32 %v409_v35, 0.0  ;;  %v417_v35 = vadd.f32 %v1950_v2, %v1919_v16 }
 0x105   :  { %v519_v52 = vpack.c.bf16 %v471_v44, %v469_v43 }
 0x106   :  { %v520_v54 = vpack.c.bf16 %v472_v49, %v470_v48  ;;  %v523_v49 = vpack.c.bf16 %v479_v38, %v477_v37  ;;  %v524_v34 = vpack.c.bf16 %v480_v40, %v478_v39  ;;  %v485_v38 = vmax.f32 %v328_v29, 0.0 }
 0x107   :  { %712 = vmatmul.bf16.gmra.mxu2 %v519_v52  ;;  %v487_v39 = vmax.f32 %v330_v31, 0.0  ;;  %v486_v40 = vmax.f32 %v417_v35, 0.0 }
 0x108   :  { %801 = vmatmul.bf16.gmra.mxu3 %v520_v54  ;;  %v312_v58 = vpop.f32.mrf.mxu0 }
 0x109   :  { %v401_v60 = vpop.f32.mrf.mxu1  ;;  %v313_v61 = vadd.f32 %v312_v58, %v1916_v15  ;;  %v323_v58 = vadd.f32 %v1940_v47, %v1916_v15 }
 0x10a   :  { %v402_v62 = vadd.f32 %v401_v60, %v1919_v16  ;;  %v325_v60 = vadd.f32 %v1945_v53, %v1916_v15 }
 0x10b   :  { %v473_v8 = vmax.f32 %v313_v61, 0.0  ;;  %v412_v61 = vadd.f32 %v1938_v45, %v1919_v16 }
 0x10c   :  { %v474_v12 = vmax.f32 %v402_v62, 0.0  ;;  %v414_v62 = vadd.f32 %v1942_v51, %v1919_v16 }
 0x110   :  { %v314_v63 = vpop.f32.mrf.mxu0 }
 0x111   :  { %v315_v0 = vadd.f32 %v314_v63, %v1916_v15  ;;  %v403_v5 = vpop.f32.mrf.mxu1 }
 0x112   :  { %v404_v7 = vadd.f32 %v403_v5, %v1919_v16  ;;  %v483_v5 = vmax.f32 %v325_v60, 0.0 }
 0x113   :  { %v475_v10 = vmax.f32 %v315_v0, 0.0  ;;  %v481_v0 = vmax.f32 %v323_v58, 0.0  ;;  %v424_v58 = vadd.f32 %v1970_v41, %v1919_v16 }
 0x114   :  { %v476_v13 = vmax.f32 %v404_v7, 0.0  ;;  %v482_v7 = vmax.f32 %v412_v61, 0.0 }
 0x115   :  { %v521_v17 = vpack.c.bf16 %v475_v10, %v473_v8  ;;  %v484_v8 = vmax.f32 %v414_v62, 0.0 }
 0x116   :  { %v522_v18 = vpack.c.bf16 %v476_v13, %v474_v12 }
 0x117   :  { %717 = vmatmul.bf16.gmra.mxu2 %v521_v17  ;;  %v526_v53 = vpack.c.bf16 %v484_v8, %v482_v7 }
 0x118   :  { %806 = vmatmul.bf16.gmra.mxu3 %v522_v18  ;;  %v525_v18 = vpack.c.bf16 %v483_v5, %v481_v0  ;;  %v492_v0 = vmax.f32 %v424_v58, 0.0 }
 0x11a   :  { %v678_v22 = vpop.f32.mrf.mxu2 }
 0x11b   :  { %v767_v27 = vpop.f32.mrf.mxu3  ;;  %v679_v36 = vadd.f32 %v2029_v24, %v678_v22 }
 0x11d   :  { %v768_v44 = vadd.f32 %v767_v27, %v679_v36  ;;  %v419_v36 = vadd.f32 %v1958_v11, %v1919_v16 }
 0x11f   :  { %v847_v52 = vmax.f32 %v768_v44, 0.0 }
 0x122   :  { %v680_v43 = vpop.f32.mrf.mxu2 }
 0x123   :  { %v681_v46 = vadd.f32 %v2029_v24, %v680_v43  ;;  %v769_v23 = vpop.f32.mrf.mxu3  ;;  %v488_v43 = vmax.f32 %v419_v36, 0.0 }
 0x125   :  { %v770_v48 = vadd.f32 %v769_v23, %v681_v46  ;;  %v528_v14 = vpack.c.bf16 %v488_v43, %v486_v40 }
 0x127   :  { %v848_v54 = vmax.f32 %v770_v48, 0.0  ;;  %722 = vmatmul.bf16.gmra.mxu2 %v523_v49  ;;  %v527_v49 = vpack.c.bf16 %v487_v39, %v485_v38 }
 0x128   :  { %811 = vmatmul.bf16.gmra.mxu3 %v524_v34 }
 0x129   :  { %v879_v20 = vpack.c.bf16 %v848_v54, %v847_v52 }
 0x12a   :  { %v683_v33 = vpop.f32.mrf.mxu2 }
 0x12b   :  { %v772_v56 = vpop.f32.mrf.mxu3  ;;  %1542 = vmatmul.msk.bf16.vlgmr.msrb.gmra.mxu0 %vm931_vm1, %v879_v20  ;;  %v684_v63 = vadd.f32 %v2029_v24, %v683_v33  ;;  %v333_v20 = vadd.f32 %v1964_v26, %v1916_v15  ;;  %v335_v33 = vadd.f32 %v1972_v42, %v1916_v15 }
 0x12d   :  { %v773_v12 = vadd.f32 %v772_v56, %v684_v63  ;;  %v422_v56 = vadd.f32 %v1962_v25, %v1919_v16  ;;  %v489_v61 = vmax.f32 %v333_v20, 0.0  ;;  %v491_v62 = vmax.f32 %v335_v33, 0.0 }
 0x12f   :  { %v849_v22 = vmax.f32 %v773_v12, 0.0  ;;  %v490_v63 = vmax.f32 %v422_v56, 0.0  ;;  %v529_v12 = vpack.c.bf16 %v491_v62, %v489_v61  ;;  %v348_v62 = vadd.f32 %v2016_v59, %v1916_v15 }
 0x131   :  { %v530_v42 = vpack.c.bf16 %v492_v0, %v490_v63  ;;  %v350_v63 = vadd.f32 %v2024_v9, %v1916_v15  ;;  %v437_v0 = vadd.f32 %v2014_v57, %v1919_v16 }
 0x132   :  { %v685_v10 = vpop.f32.mrf.mxu2 }
 0x133   :  { %v686_v13 = vadd.f32 %v2029_v24, %v685_v10  ;;  %v774_v47 = vpop.f32.mrf.mxu3 }
 0x135   :  { %v775_v17 = vadd.f32 %v774_v47, %v686_v13 }
 0x137   :  { %v850_v27 = vmax.f32 %v775_v17, 0.0  ;;  %727 = vmatmul.bf16.gmra.mxu2 %v525_v18  ;;  %v338_v18 = vadd.f32 %v1979_v55, %v1916_v15 }
 0x138   :  { %816 = vmatmul.bf16.gmra.mxu3 %v526_v53  ;;  %v340_v53 = vadd.f32 %v1984_v3, %v1916_v15 }
 0x139   :  { %v880_v45 = vpack.c.bf16 %v850_v27, %v849_v22  ;;  %v427_v22 = vadd.f32 %v1976_v50, %v1919_v16  ;;  %v429_v27 = vadd.f32 %v1982_v1, %v1919_v16 }
 0x13a   :  { %v688_v51 = vpop.f32.mrf.mxu2 }
 0x13b   :  { %v777_v28 = vpop.f32.mrf.mxu3  ;;  %1543 = vmatmul.msk.bf16.gmra.mxu0 %vm931_vm1, %v880_v45  ;;  %v689_v37 = vadd.f32 %v2029_v24, %v688_v51  ;;  %v493_v51 = vmax.f32 %v338_v18, 0.0  ;;  %v494_v29 = vmax.f32 %v427_v22, 0.0  ;;  %v496_v31 = vmax.f32 %v429_v27, 0.0 }
 0x13d   :  { %v778_v46 = vadd.f32 %v777_v28, %v689_v37  ;;  %v495_v28 = vmax.f32 %v340_v53, 0.0  ;;  %v532_v3 = vpack.c.bf16 %v496_v31, %v494_v29 }
 0x13f   :  { %v851_v34 = vmax.f32 %v778_v46, 0.0  ;;  %v531_v39 = vpack.c.bf16 %v495_v28, %v493_v51  ;;  %v343_v46 = vadd.f32 %v1992_v21, %v1916_v15  ;;  %v1619_v51 = vld [vmem:[%s2328_s8] sm:$0xff] }
 0x140   :  { %1185 = vmatpush.bf16.msrb.mxu1 %v1619_v51 }
 0x142   :  { %v690_v44 = vpop.f32.mrf.mxu2 }
 0x143   :  { %v691_v23 = vadd.f32 %v2029_v24, %v690_v44  ;;  %v779_v4 = vpop.f32.mrf.mxu3 }
 0x145   :  { %v780_v48 = vadd.f32 %v779_v4, %v691_v23  ;;  %v345_v23 = vadd.f32 %v2000_v32, %v1916_v15  ;;  %v432_v4 = vadd.f32 %v1990_v19, %v1919_v16 }
 0x147   :  { %v852_v52 = vmax.f32 %v780_v48, 0.0  ;;  %732 = vmatmul.bf16.gmra.mxu2 %v527_v49  ;;  %v434_v48 = vadd.f32 %v1997_v30, %v1919_v16 }
 0x148   :  { %821 = vmatmul.bf16.gmra.mxu3 %v528_v14  ;;  %v497_v14 = vmax.f32 %v343_v46, 0.0 }
 0x149   :  { %v881_v2 = vpack.c.bf16 %v852_v52, %v851_v34  ;;  %v499_v34 = vmax.f32 %v345_v23, 0.0  ;;  %v498_v52 = vmax.f32 %v432_v4, 0.0  ;;  %v2119_v4 = vld [vmem:[%s2327_s7] ss:$0 sm:$0xff] }
 0x14a   :  { %v693_v11 = vpop.f32.mrf.mxu2 }
 0x14b   :  { %v782_v54 = vpop.f32.mrf.mxu3  ;;  %1544 = vmatmul.msk.bf16.gmra.mxu0 %vm931_vm1, %v881_v2  ;;  %v694_v60 = vadd.f32 %v2029_v24, %v693_v11  ;;  %v500_v2 = vmax.f32 %v434_v48, 0.0  ;;  %v533_v56 = vpack.c.bf16 %v499_v34, %v497_v14 }
 0x14d   :  { %v783_v7 = vadd.f32 %v782_v54, %v694_v60  ;;  %v534_v32 = vpack.c.bf16 %v500_v2, %v498_v52 }
 0x14f   :  { %v853_v13 = vmax.f32 %v783_v7, 0.0 }
 0x152   :  { %v695_v5 = vpop.f32.mrf.mxu2 }
 0x153   :  { %v696_v8 = vadd.f32 %v2029_v24, %v695_v5  ;;  %v784_v26 = vpop.f32.mrf.mxu3  ;;  %v439_v5 = vadd.f32 %v2021_v6, %v1919_v16 }
 0x155   :  { %v785_v10 = vadd.f32 %v784_v26, %v696_v8  ;;  %v501_v8 = vmax.f32 %v348_v62, 0.0  ;;  %v503_v26 = vmax.f32 %v350_v63, 0.0 }
 0x157   :  { %v854_v47 = vmax.f32 %v785_v10, 0.0  ;;  %737 = vmatmul.bf16.gmra.mxu2 %v529_v12  ;;  %v502_v10 = vmax.f32 %v437_v0, 0.0  ;;  %v504_v12 = vmax.f32 %v439_v5, 0.0 }
 0x158   :  { %826 = vmatmul.bf16.gmra.mxu3 %v530_v42 }
 0x159   :  { %v882_v25 = vpack.c.bf16 %v854_v47, %v853_v13  ;;  %v536_v15 = vpack.c.bf16 %v504_v12, %v502_v10 }
 0x15a   :  { %v698_v41 = vpop.f32.mrf.mxu2 }
 0x15b   :  { %v787_v17 = vpop.f32.mrf.mxu3  ;;  %1545 = vmatmul.msk.bf16.gmra.mxu0 %vm931_vm1, %v882_v25  ;;  %v699_v45 = vadd.f32 %v2029_v24, %v698_v41  ;;  %v535_v41 = vpack.c.bf16 %v503_v26, %v501_v8 }
 0x15d   :  { %v788_v36 = vadd.f32 %v787_v17, %v699_v45 }
 0x15f   :  { %v855_v40 = vmax.f32 %v788_v36, 0.0 }
 0x162   :  { %v700_v35 = vpop.f32.mrf.mxu2 }
 0x163   :  { %v701_v37 = vadd.f32 %v2029_v24, %v700_v35  ;;  %v789_v55 = vpop.f32.mrf.mxu3 }
 0x165   :  { %v790_v38 = vadd.f32 %v789_v55, %v701_v37 }
 0x167   :  { %v856_v43 = vmax.f32 %v790_v38, 0.0  ;;  %742 = vmatmul.bf16.gmra.mxu2 %v531_v39 }
 0x168   :  { %831 = vmatmul.bf16.gmra.mxu3 %v532_v3 }
 0x169   :  { %v883_v50 = vpack.c.bf16 %v856_v43, %v855_v40 }
 0x16a   :  { %v703_v1 = vpop.f32.mrf.mxu2 }
 0x16b   :  { %v792_v44 = vpop.f32.mrf.mxu3  ;;  %1546 = vmatmul.msk.bf16.gmra.mxu0 %vm931_vm1, %v883_v50  ;;  %v704_v49 = vadd.f32 %v2029_v24, %v703_v1 }
 0x16d   :  { %v793_v54 = vadd.f32 %v792_v44, %v704_v49 }
 0x16f   :  { %v857_v58 = vmax.f32 %v793_v54, 0.0 }
 0x172   :  { %v705_v11 = vpop.f32.mrf.mxu2 }
 0x173   :  { %v706_v20 = vadd.f32 %v2029_v24, %v705_v11  ;;  %v794_v21 = vpop.f32.mrf.mxu3 }
 0x175   :  { %v795_v33 = vadd.f32 %v794_v21, %v706_v20 }
 0x177   :  { %v858_v60 = vmax.f32 %v795_v33, 0.0  ;;  %747 = vmatmul.bf16.gmra.mxu2 %v533_v56 }
 0x178   :  { %836 = vmatmul.bf16.gmra.mxu3 %v534_v32 }
 0x179   :  { %v884_v19 = vpack.c.bf16 %v858_v60, %v857_v58 }
 0x17a   :  { %v708_v30 = vpop.f32.mrf.mxu2 }
 0x17b   :  { %v797_v61 = vpop.f32.mrf.mxu3  ;;  %1547 = vmatmul.msk.bf16.gmra.mxu0 %vm931_vm1, %v884_v19  ;;  %v709_v7 = vadd.f32 %v2029_v24, %v708_v30 }
 0x17d   :  { %v798_v13 = vadd.f32 %v797_v61, %v709_v7 }
 0x17f   :  { %v859_v9 = vmax.f32 %v798_v13, 0.0 }
 0x182   :  { %v710_v42 = vpop.f32.mrf.mxu2 }
 0x183   :  { %v711_v47 = vadd.f32 %v2029_v24, %v710_v42  ;;  %v799_v59 = vpop.f32.mrf.mxu3 }
 0x185   :  { %v800_v25 = vadd.f32 %v799_v59, %v711_v47 }
 0x187   :  { %v860_v17 = vmax.f32 %v800_v25, 0.0  ;;  %752 = vmatmul.bf16.gmra.mxu2 %v535_v41 }
 0x188   :  { %841 = vmatmul.bf16.gmra.mxu3 %v536_v15 }
 0x189   :  { %v885_v57 = vpack.c.bf16 %v860_v17, %v859_v9 }
 0x18a   :  { %v713_v16 = vpop.f32.mrf.mxu2 }
 0x18b   :  { %v802_v6 = vpop.f32.mrf.mxu3  ;;  %1548 = vmatmul.msk.bf16.gmra.mxu0 %vm931_vm1, %v885_v57  ;;  %v714_v18 = vadd.f32 %v2029_v24, %v713_v16 }
 0x18d   :  { %v803_v22 = vadd.f32 %v802_v6, %v714_v18 }
 0x18f   :  { %v861_v29 = vmax.f32 %v803_v22, 0.0 }
 0x192   :  { %v715_v53 = vpop.f32.mrf.mxu2 }
 0x193   :  { %v716_v27 = vadd.f32 %v2029_v24, %v715_v53  ;;  %v804_v45 = vpop.f32.mrf.mxu3 }
 0x195   :  { %v805_v28 = vadd.f32 %v804_v45, %v716_v27 }
 0x197   :  { %v862_v31 = vmax.f32 %v805_v28, 0.0 }
 0x199   :  { %v886_v35 = vpack.c.bf16 %v862_v31, %v861_v29 }
 0x19a   :  { %v718_v36 = vpop.f32.mrf.mxu2 }
 0x19b   :  { %v807_v37 = vpop.f32.mrf.mxu3  ;;  %1549 = vmatmul.msk.bf16.gmra.mxu0 %vm931_vm1, %v886_v35  ;;  %v719_v55 = vadd.f32 %v2029_v24, %v718_v36 }
 0x19d   :  { %v808_v39 = vadd.f32 %v807_v37, %v719_v55 }
 0x19f   :  { %v863_v50 = vmax.f32 %v808_v39, 0.0 }
 0x1a2   :  { %v720_v38 = vpop.f32.mrf.mxu2 }
 0x1a3   :  { %v721_v3 = vadd.f32 %v2029_v24, %v720_v38  ;;  %v809_v40 = vpop.f32.mrf.mxu3 }
 0x1a5   :  { %v810_v43 = vadd.f32 %v809_v40, %v721_v3 }
 0x1a7   :  { %v864_v1 = vmax.f32 %v810_v43, 0.0 }
 0x1a8   :  { %v989_v44 = vpop.f32.mrf.mxu0 }
 0x1a9   :  { %v887_v46 = vpack.c.bf16 %v864_v1, %v863_v50  ;;  %v990_v49 = vadd.f32 %v2119_v4, %v989_v44 }
 0x1aa   :  { %v723_v23 = vpop.f32.mrf.mxu2 }
 0x1ab   :  { %v812_v48 = vpop.f32.mrf.mxu3  ;;  %1550 = vmatmul.msk.bf16.gmra.mxu0 %vm931_vm1, %v887_v46  ;;  %v724_v14 = vadd.f32 %v2029_v24, %v723_v23  ;;  %v1069_v11 = vmax.f32 %v990_v49, 0.0 }
 0x1ad   :  { %v813_v54 = vadd.f32 %v812_v48, %v724_v14 }
 0x1af   :  { %v865_v58 = vmax.f32 %v813_v54, 0.0 }
 0x1b0   :  { %v991_v34 = vpop.f32.mrf.mxu0 }
 0x1b1   :  { %v992_v52 = vadd.f32 %v2119_v4, %v991_v34 }
 0x1b2   :  { %v725_v2 = vpop.f32.mrf.mxu2 }
 0x1b3   :  { %v1070_v20 = vmax.f32 %v992_v52, 0.0  ;;  %v726_v21 = vadd.f32 %v2029_v24, %v725_v2  ;;  %v814_v33 = vpop.f32.mrf.mxu3 }
 0x1b5   :  { %v1101_v56 = vpack.c.bf16 %v1070_v20, %v1069_v11  ;;  %v815_v32 = vadd.f32 %v814_v33, %v726_v21 }
 0x1b7   :  { %v866_v60 = vmax.f32 %v815_v32, 0.0  ;;  %1562 = vmatmul.msk.bf16.vlgmr.msrb.gmra.mxu1 %vm1129_vm2, %v1101_v56 }
 0x1b8   :  { %v994_v19 = vpop.f32.mrf.mxu0 }
 0x1b9   :  { %v888_v30 = vpack.c.bf16 %v866_v60, %v865_v58  ;;  %v995_v63 = vadd.f32 %v2119_v4, %v994_v19 }
 0x1ba   :  { %v728_v61 = vpop.f32.mrf.mxu2 }
 0x1bb   :  { %v817_v62 = vpop.f32.mrf.mxu3  ;;  %1551 = vmatmul.msk.bf16.gmra.mxu0 %vm931_vm1, %v888_v30  ;;  %v729_v0 = vadd.f32 %v2029_v24, %v728_v61  ;;  %v1071_v26 = vmax.f32 %v995_v63, 0.0 }
 0x1bd   :  { %v818_v10 = vadd.f32 %v817_v62, %v729_v0 }
 0x1bf   :  { %v867_v25 = vmax.f32 %v818_v10, 0.0 }
 0x1c0   :  { %v996_v5 = vpop.f32.mrf.mxu0 }
 0x1c1   :  { %v997_v7 = vadd.f32 %v2119_v4, %v996_v5 }
 0x1c2   :  { %v730_v8 = vpop.f32.mrf.mxu2 }
 0x1c3   :  { %v1072_v12 = vmax.f32 %v997_v7, 0.0  ;;  %v731_v42 = vadd.f32 %v2029_v24, %v730_v8  ;;  %v819_v13 = vpop.f32.mrf.mxu3 }
 0x1c5   :  { %v820_v47 = vadd.f32 %v819_v13, %v731_v42  ;;  %v1102_v59 = vpack.c.bf16 %v1072_v12, %v1071_v26 }
 0x1c7   :  { %v868_v41 = vmax.f32 %v820_v47, 0.0  ;;  %1563 = vmatmul.msk.bf16.gmra.mxu1 %vm1129_vm2, %v1102_v59 }
 0x1c8   :  { %v999_v15 = vpop.f32.mrf.mxu0 }
 0x1c9   :  { %v889_v9 = vpack.c.bf16 %v868_v41, %v867_v25  ;;  %v1000_v16 = vadd.f32 %v2119_v4, %v999_v15 }
 0x1ca   :  { %v733_v17 = vpop.f32.mrf.mxu2 }
 0x1cb   :  { %v822_v57 = vpop.f32.mrf.mxu3  ;;  %1552 = vmatmul.msk.bf16.gmra.mxu0 %vm931_vm1, %v889_v9  ;;  %v734_v6 = vadd.f32 %v2029_v24, %v733_v17  ;;  %v1073_v27 = vmax.f32 %v1000_v16, 0.0 }
 0x1cd   :  { %v823_v45 = vadd.f32 %v822_v57, %v734_v6 }
 0x1cf   :  { %v869_v36 = vmax.f32 %v823_v45, 0.0 }
 0x1d0   :  { %v1001_v18 = vpop.f32.mrf.mxu0 }
 0x1d1   :  { %v1002_v53 = vadd.f32 %v2119_v4, %v1001_v18 }
 0x1d2   :  { %v735_v22 = vpop.f32.mrf.mxu2 }
 0x1d3   :  { %v1074_v51 = vmax.f32 %v1002_v53, 0.0  ;;  %v736_v28 = vadd.f32 %v2029_v24, %v735_v22  ;;  %v824_v29 = vpop.f32.mrf.mxu3 }
 0x1d5   :  { %v825_v31 = vadd.f32 %v824_v29, %v736_v28  ;;  %v1103_v35 = vpack.c.bf16 %v1074_v51, %v1073_v27 }
 0x1d7   :  { %v870_v37 = vmax.f32 %v825_v31, 0.0  ;;  %1564 = vmatmul.msk.bf16.gmra.mxu1 %vm1129_vm2, %v1103_v35 }
 0x1d8   :  { %v1004_v55 = vpop.f32.mrf.mxu0 }
 0x1d9   :  { %v890_v38 = vpack.c.bf16 %v870_v37, %v869_v36  ;;  %v1005_v40 = vadd.f32 %v2119_v4, %v1004_v55 }
 0x1da   :  { %v738_v39 = vpop.f32.mrf.mxu2 }
 0x1db   :  { %v827_v3 = vpop.f32.mrf.mxu3  ;;  %1553 = vmatmul.msk.bf16.gmra.mxu0 %vm931_vm1, %v890_v38  ;;  %v739_v43 = vadd.f32 %v2029_v24, %v738_v39  ;;  %v1075_v46 = vmax.f32 %v1005_v40, 0.0 }
 0x1dd   :  { %v828_v23 = vadd.f32 %v827_v3, %v739_v43 }
 0x1df   :  { %v871_v2 = vmax.f32 %v828_v23, 0.0 }
 0x1e0   :  { %v1006_v50 = vpop.f32.mrf.mxu0 }
 0x1e1   :  { %v1007_v1 = vadd.f32 %v2119_v4, %v1006_v50 }
 0x1e2   :  { %v740_v44 = vpop.f32.mrf.mxu2 }
 0x1e3   :  { %v1076_v48 = vmax.f32 %v1007_v1, 0.0  ;;  %v741_v49 = vadd.f32 %v2029_v24, %v740_v44  ;;  %v829_v14 = vpop.f32.mrf.mxu3 }
 0x1e5   :  { %v1104_v34 = vpack.c.bf16 %v1076_v48, %v1075_v46  ;;  %v830_v52 = vadd.f32 %v829_v14, %v741_v49 }
 0x1e7   :  { %v872_v11 = vmax.f32 %v830_v52, 0.0  ;;  %1565 = vmatmul.msk.bf16.gmra.mxu1 %vm1129_vm2, %v1104_v34 }
 0x1e8   :  { %v1009_v54 = vpop.f32.mrf.mxu0 }
 0x1e9   :  { %v891_v20 = vpack.c.bf16 %v872_v11, %v871_v2  ;;  %v1010_v56 = vadd.f32 %v2119_v4, %v1009_v54 }
 0x1ea   :  { %v743_v21 = vpop.f32.mrf.mxu2 }
 0x1eb   :  { %v832_v33 = vpop.f32.mrf.mxu3  ;;  %1554 = vmatmul.msk.bf16.gmra.mxu0 %vm931_vm1, %v891_v20  ;;  %v744_v32 = vadd.f32 %v2029_v24, %v743_v21  ;;  %v1077_v30 = vmax.f32 %v1010_v56, 0.0 }
 0x1ed   :  { %v833_v61 = vadd.f32 %v832_v33, %v744_v32 }
 0x1ef   :  { %v873_v8 = vmax.f32 %v833_v61, 0.0 }
 0x1f0   :  { %v1011_v58 = vpop.f32.mrf.mxu0 }
 0x1f1   :  { %v1012_v60 = vadd.f32 %v2119_v4, %v1011_v58 }
 0x1f2   :  { %v745_v19 = vpop.f32.mrf.mxu2 }
 0x1f3   :  { %v1078_v62 = vmax.f32 %v1012_v60, 0.0  ;;  %v746_v63 = vadd.f32 %v2029_v24, %v745_v19  ;;  %v834_v0 = vpop.f32.mrf.mxu3 }
 0x1f5   :  { %v1105_v5 = vpack.c.bf16 %v1078_v62, %v1077_v30  ;;  %v835_v7 = vadd.f32 %v834_v0, %v746_v63 }
 0x1f7   :  { %v874_v26 = vmax.f32 %v835_v7, 0.0  ;;  %1566 = vmatmul.msk.bf16.gmra.mxu1 %vm1129_vm2, %v1105_v5 }
 0x1f8   :  { %v1014_v10 = vpop.f32.mrf.mxu0 }
 0x1f9   :  { %v892_v12 = vpack.c.bf16 %v874_v26, %v873_v8  ;;  %v1015_v47 = vadd.f32 %v2119_v4, %v1014_v10 }
 0x1fa   :  { %v748_v42 = vpop.f32.mrf.mxu2 }
 0x1fb   :  { %v837_v13 = vpop.f32.mrf.mxu3  ;;  %1555 = vmatmul.msk.bf16.gmra.mxu0 %vm931_vm1, %v892_v12  ;;  %v749_v59 = vadd.f32 %v2029_v24, %v748_v42  ;;  %v1079_v9 = vmax.f32 %v1015_v47, 0.0 }
 0x1fd   :  { %v838_v17 = vadd.f32 %v837_v13, %v749_v59 }
 0x1ff   :  { %v875_v22 = vmax.f32 %v838_v17, 0.0 }
 0x200   :  { %v1016_v25 = vpop.f32.mrf.mxu0 }
 0x201   :  { %v1017_v41 = vadd.f32 %v2119_v4, %v1016_v25 }
 0x202   :  { %v750_v15 = vpop.f32.mrf.mxu2 }
 0x203   :  { %v1080_v57 = vmax.f32 %v1017_v41, 0.0  ;;  %v751_v16 = vadd.f32 %v2029_v24, %v750_v15  ;;  %v839_v6 = vpop.f32.mrf.mxu3 }
 0x205   :  { %v1106_v18 = vpack.c.bf16 %v1080_v57, %v1079_v9  ;;  %v840_v53 = vadd.f32 %v839_v6, %v751_v16 }
 0x207   :  { %v876_v27 = vmax.f32 %v840_v53, 0.0  ;;  %1567 = vmatmul.msk.bf16.gmra.mxu1 %vm1129_vm2, %v1106_v18 }
 0x208   :  { %v1019_v45 = vpop.f32.mrf.mxu0 }
 0x209   :  { %v893_v51 = vpack.c.bf16 %v876_v27, %v875_v22  ;;  %v1020_v31 = vadd.f32 %v2119_v4, %v1019_v45 }
 0x20a   :  { %v753_v28 = vpop.f32.mrf.mxu2 }
 0x20b   :  { %v842_v29 = vpop.f32.mrf.mxu3  ;;  %1556 = vmatmul.msk.bf16.gmra.mxu0 %vm931_vm1, %v893_v51  ;;  %v754_v35 = vadd.f32 %v2029_v24, %v753_v28  ;;  %v1081_v38 = vmax.f32 %v1020_v31, 0.0 }
 0x20d   :  { %v843_v39 = vadd.f32 %v842_v29, %v754_v35 }
 0x20f   :  { %v877_v44 = vmax.f32 %v843_v39, 0.0 }
 0x210   :  { %v1021_v36 = vpop.f32.mrf.mxu0 }
 0x211   :  { %v1022_v37 = vadd.f32 %v2119_v4, %v1021_v36 }
 0x212   :  { %v755_v55 = vpop.f32.mrf.mxu2 }
 0x213   :  { %v1082_v3 = vmax.f32 %v1022_v37, 0.0  ;;  %v756_v40 = vadd.f32 %v2029_v24, %v755_v55  ;;  %v844_v43 = vpop.f32.mrf.mxu3 }
 0x215   :  { %v1107_v50 = vpack.c.bf16 %v1082_v3, %v1081_v38  ;;  %v845_v1 = vadd.f32 %v844_v43, %v756_v40 }
 0x217   :  { %v878_v46 = vmax.f32 %v845_v1, 0.0  ;;  %1568 = vmatmul.msk.bf16.gmra.mxu1 %vm1129_vm2, %v1107_v50 }
 0x218   :  { %v1024_v23 = vpop.f32.mrf.mxu0 }
 0x219   :  { %v894_v48 = vpack.c.bf16 %v878_v46, %v877_v44  ;;  %v1025_v49 = vadd.f32 %v2119_v4, %v1024_v23 }
 0x21b   :  { %1557 = vmatmul.msk.bf16.gmra.mxu0 %vm931_vm1, %v894_v48  ;;  %v1083_v52 = vmax.f32 %v1025_v49, 0.0 }
 0x220   :  { %v1026_v14 = vpop.f32.mrf.mxu0 }
 0x221   :  { %v1027_v34 = vadd.f32 %v2119_v4, %v1026_v14 }
 0x223   :  { %v1084_v2 = vmax.f32 %v1027_v34, 0.0 }
 0x225   :  { %v1108_v11 = vpack.c.bf16 %v1084_v2, %v1083_v52 }
 0x227   :  { %1569 = vmatmul.msk.bf16.gmra.mxu1 %vm1129_vm2, %v1108_v11 }
 0x228   :  { %v1029_v24 = vpop.f32.mrf.mxu0 }
 0x229   :  { %v1030_v54 = vadd.f32 %v2119_v4, %v1029_v24 }
 0x22b   :  { %v1085_v33 = vmax.f32 %v1030_v54, 0.0 }
 0x230   :  { %v1031_v20 = vpop.f32.mrf.mxu0 }
 0x231   :  { %v1032_v21 = vadd.f32 %v2119_v4, %v1031_v20 }
 0x233   :  { %v1086_v56 = vmax.f32 %v1032_v21, 0.0 }
 0x234   :  { %v2169_v32 = vpop.f32.mrf.mxu1 }
 0x235   :  { %v1109_v58 = vpack.c.bf16 %v1086_v56, %v1085_v33 }
 0x237   :  { %1570 = vmatmul.msk.bf16.gmra.mxu1 %vm1129_vm2, %v1109_v58 }
 0x238   :  { %v1034_v60 = vpop.f32.mrf.mxu0 }
 0x239   :  { %v1035_v30 = vadd.f32 %v2119_v4, %v1034_v60 }
 0x23b   :  { %v1087_v63 = vmax.f32 %v1035_v30, 0.0 }
 0x23c   :  { %v2172_v19 = vpop.f32.mrf.mxu1 }
 0x240   :  { %v1036_v61 = vpop.f32.mrf.mxu0 }
 0x241   :  { %v1037_v62 = vadd.f32 %v2119_v4, %v1036_v61  ;;  %v2226_v61 = vld [vmem:[%s2329_s9] ss:$0 sm:$0xff] }
 0x243   :  { %v1088_v0 = vmax.f32 %v1037_v62, 0.0  ;;  %v1188_v62 = vadd.f32 %v2226_v61, %v2169_v32 }
 0x244   :  { %v2176_v5 = vpop.f32.mrf.mxu1 }
 0x245   :  { %v1110_v7 = vpack.c.bf16 %v1088_v0, %v1087_v63  ;;  %v1267_v0 = vmax.f32 %v1188_v62, 0.0  ;;  %v1193_v32 = vadd.f32 %v2226_v61, %v2176_v5 }
 0x247   :  { %1571 = vmatmul.msk.bf16.gmra.mxu1 %vm1129_vm2, %v1110_v7 }
 0x248   :  { %v1039_v8 = vpop.f32.mrf.mxu0 }
 0x249   :  { %v1040_v10 = vadd.f32 %v2119_v4, %v1039_v8 }
 0x24b   :  { %v1089_v13 = vmax.f32 %v1040_v10, 0.0  ;;  %v1190_v10 = vadd.f32 %v2226_v61, %v2172_v19 }
 0x24c   :  { %v2179_v26 = vpop.f32.mrf.mxu1 }
 0x24d   :  { %v1195_v19 = vadd.f32 %v2226_v61, %v2179_v26 }
 0x250   :  { %v1041_v12 = vpop.f32.mrf.mxu0 }
 0x251   :  { %v1042_v42 = vadd.f32 %v2119_v4, %v1041_v12 }
 0x253   :  { %v1090_v47 = vmax.f32 %v1042_v42, 0.0 }
 0x254   :  { %v2183_v59 = vpop.f32.mrf.mxu1 }
 0x255   :  { %v1111_v25 = vpack.c.bf16 %v1090_v47, %v1089_v13  ;;  %v1268_v13 = vmax.f32 %v1190_v10, 0.0  ;;  %v1198_v5 = vadd.f32 %v2226_v61, %v2183_v59 }
 0x257   :  { %1572 = vmatmul.msk.bf16.gmra.mxu1 %vm1129_vm2, %v1111_v25 }
 0x258   :  { %v1044_v41 = vpop.f32.mrf.mxu0 }
 0x259   :  { %v1045_v9 = vadd.f32 %v2119_v4, %v1044_v41 }
 0x25b   :  { %v1091_v16 = vmax.f32 %v1045_v9, 0.0 }
 0x25c   :  { %v2186_v15 = vpop.f32.mrf.mxu1 }
 0x25d   :  { %v1200_v26 = vadd.f32 %v2226_v61, %v2186_v15 }
 0x260   :  { %v1046_v17 = vpop.f32.mrf.mxu0 }
 0x261   :  { %v1047_v57 = vadd.f32 %v2119_v4, %v1046_v17  ;;  %v1269_v17 = vmax.f32 %v1193_v32, 0.0 }
 0x263   :  { %v1092_v6 = vmax.f32 %v1047_v57, 0.0 }
 0x264   :  { %v2190_v18 = vpop.f32.mrf.mxu1 }
 0x265   :  { %v1112_v53 = vpack.c.bf16 %v1092_v6, %v1091_v16  ;;  %v1203_v59 = vadd.f32 %v2226_v61, %v2190_v18 }
 0x267   :  { %1573 = vmatmul.msk.bf16.gmra.mxu1 %vm1129_vm2, %v1112_v53 }
 0x268   :  { %v1049_v22 = vpop.f32.mrf.mxu0 }
 0x269   :  { %v1050_v45 = vadd.f32 %v2119_v4, %v1049_v22  ;;  %v1270_v22 = vmax.f32 %v1195_v19, 0.0 }
 0x26b   :  { %v1093_v29 = vmax.f32 %v1050_v45, 0.0 }
 0x26c   :  { %v2193_v27 = vpop.f32.mrf.mxu1 }
 0x26d   :  { %v1205_v15 = vadd.f32 %v2226_v61, %v2193_v27 }
 0x270   :  { %v1051_v51 = vpop.f32.mrf.mxu0 }
 0x271   :  { %v1052_v28 = vadd.f32 %v2119_v4, %v1051_v51 }
 0x273   :  { %v1094_v31 = vmax.f32 %v1052_v28, 0.0 }
 0x274   :  { %v2197_v35 = vpop.f32.mrf.mxu1 }
 0x275   :  { %v1113_v36 = vpack.c.bf16 %v1094_v31, %v1093_v29  ;;  %v1271_v31 = vmax.f32 %v1198_v5, 0.0 }
 0x277   :  { %1574 = vmatmul.msk.bf16.gmra.mxu1 %vm1129_vm2, %v1113_v36 }
 0x278   :  { %v1054_v37 = vpop.f32.mrf.mxu0 }
 0x279   :  { %v1055_v38 = vadd.f32 %v2119_v4, %v1054_v37 }
 0x27b   :  { %v1095_v40 = vmax.f32 %v1055_v38, 0.0 }
 0x27c   :  { %v2200_v55 = vpop.f32.mrf.mxu1 }
 0x27d   :  { %v1210_v62 = vadd.f32 %v2226_v61, %v2200_v55 }
 0x280   :  { %v1056_v39 = vpop.f32.mrf.mxu0 }
 0x281   :  { %v1057_v3 = vadd.f32 %v2119_v4, %v1056_v39 }
 0x283   :  { %v1096_v43 = vmax.f32 %v1057_v3, 0.0  ;;  %v1272_v3 = vmax.f32 %v1200_v26, 0.0 }
 0x284   :  { %v2204_v50 = vpop.f32.mrf.mxu1 }
 0x285   :  { %v1114_v1 = vpack.c.bf16 %v1096_v43, %v1095_v40 }
 0x287   :  { %1575 = vmatmul.msk.bf16.gmra.mxu1 %vm1129_vm2, %v1114_v1 }
 0x288   :  { %v1059_v44 = vpop.f32.mrf.mxu0 }
 0x289   :  { %v1060_v23 = vadd.f32 %v2119_v4, %v1059_v44 }
 0x28b   :  { %v1097_v14 = vmax.f32 %v1060_v23, 0.0  ;;  %v1273_v23 = vmax.f32 %v1203_v59, 0.0 }
 0x28c   :  { %v2207_v46 = vpop.f32.mrf.mxu1 }
 0x290   :  { %v1061_v48 = vpop.f32.mrf.mxu0 }
 0x291   :  { %v1062_v49 = vadd.f32 %v2119_v4, %v1061_v48 }
 0x293   :  { %v1098_v34 = vmax.f32 %v1062_v49, 0.0 }
 0x294   :  { %v2211_v52 = vpop.f32.mrf.mxu1 }
 0x295   :  { %v1115_v2 = vpack.c.bf16 %v1098_v34, %v1097_v14 }
 0x297   :  { %1576 = vmatmul.msk.bf16.gmra.mxu1 %vm1129_vm2, %v1115_v2  ;;  %v1274_v2 = vmax.f32 %v1205_v15, 0.0 }
 0x298   :  { %v1064_v11 = vpop.f32.mrf.mxu0 }
 0x299   :  { %v1065_v54 = vadd.f32 %v2119_v4, %v1064_v11 }
 0x29b   :  { %v1099_v33 = vmax.f32 %v1065_v54, 0.0 }
 0x29c   :  { %v2214_v24 = vpop.f32.mrf.mxu1 }
 0x2a0   :  { %v1066_v20 = vpop.f32.mrf.mxu0 }
 0x2a1   :  { %v1067_v21 = vadd.f32 %v2119_v4, %v1066_v20  ;;  %v1208_v20 = vadd.f32 %v2226_v61, %v2197_v35 }
 0x2a3   :  { %v1100_v56 = vmax.f32 %v1067_v21, 0.0 }
 0x2a4   :  { %v2218_v58 = vpop.f32.mrf.mxu1 }
 0x2a5   :  { %v1116_v60 = vpack.c.bf16 %v1100_v56, %v1099_v33  ;;  %v1275_v33 = vmax.f32 %v1208_v20, 0.0  ;;  %v1223_v55 = vadd.f32 %v2226_v61, %v2218_v58  ;;  %v1218_v58 = vadd.f32 %v2226_v61, %v2211_v52 }
 0x2a6   :  { %v1213_v52 = vadd.f32 %v2226_v61, %v2204_v50  ;;  %v1315_v50 = vld [vmem:[%s2330_s10] sm:$0xf] }
 0x2a7   :  { %1577 = vmatmul.msk.bf16.gmra.mxu1 %vm1129_vm2, %v1116_v60 }
 0x2ac   :  { %v2221_v30 = vpop.f32.mrf.mxu1 }
 0x2b4   :  { %v1227_v63 = vpop.f32.mrf.mxu1 }
 0x2b5   :  { %v1228_v4 = vadd.f32 %v2226_v61, %v1227_v63 }
 0x2b7   :  { %v1283_v7 = vmax.f32 %v1228_v4, 0.0  ;;  %v1276_v4 = vmax.f32 %v1210_v62, 0.0 }
 0x2b9   :  { %v2231_v8 = vsub.f32 %v1267_v0, %v1283_v7 }
 0x2bc   :  { %v1229_v12 = vpop.f32.mrf.mxu1 }
 0x2bd   :  { %v1230_v42 = vadd.f32 %v2226_v61, %v1229_v12 }
 0x2bf   :  { %v1284_v47 = vmax.f32 %v1230_v42, 0.0 }
 0x2c1   :  { %v2236_v25 = vsub.f32 %v1268_v13, %v1284_v47  ;;  %v1225_v47 = vadd.f32 %v2226_v61, %v2221_v30 }
 0x2c4   :  { %v1232_v41 = vpop.f32.mrf.mxu1 }
 0x2c5   :  { %v1233_v9 = vadd.f32 %v2226_v61, %v1232_v41 }
 0x2c7   :  { %v1285_v57 = vmax.f32 %v1233_v9, 0.0 }
 0x2c9   :  { %v2241_v16 = vsub.f32 %v1269_v17, %v1285_v57  ;;  %v1282_v17 = vmax.f32 %v1225_v47, 0.0 }
 0x2cc   :  { %v1234_v6 = vpop.f32.mrf.mxu1 }
 0x2cd   :  { %v1235_v53 = vadd.f32 %v2226_v61, %v1234_v6 }
 0x2cf   :  { %v1286_v45 = vmax.f32 %v1235_v53, 0.0 }
 0x2d1   :  { %v2246_v51 = vsub.f32 %v1270_v22, %v1286_v45  ;;  %v1220_v22 = vadd.f32 %v2226_v61, %v2214_v24  ;;  %v1281_v45 = vmax.f32 %v1223_v55, 0.0  ;;  %v1215_v24 = vadd.f32 %v2226_v61, %v2207_v46 }
 0x2d3   :  { %v1278_v59 = vmax.f32 %v1215_v24, 0.0 }
 0x2d4   :  { %v1237_v28 = vpop.f32.mrf.mxu1 }
 0x2d5   :  { %v1238_v29 = vadd.f32 %v2226_v61, %v1237_v28 }
 0x2d7   :  { %v1287_v36 = vmax.f32 %v1238_v29, 0.0  ;;  %v1280_v29 = vmax.f32 %v1220_v22, 0.0 }
 0x2d9   :  { %v2251_v37 = vsub.f32 %v1271_v31, %v1287_v36 }
 0x2dc   :  { %v1239_v38 = vpop.f32.mrf.mxu1 }
 0x2dd   :  { %v1240_v39 = vadd.f32 %v2226_v61, %v1239_v38  ;;  %v1279_v38 = vmax.f32 %v1218_v58, 0.0 }
 0x2df   :  { %v1288_v40 = vmax.f32 %v1240_v39, 0.0 }
 0x2e1   :  { %v2256_v43 = vsub.f32 %v1272_v3, %v1288_v40 }
 0x2e4   :  { %v1242_v1 = vpop.f32.mrf.mxu1 }
 0x2e5   :  { %v1243_v44 = vadd.f32 %v2226_v61, %v1242_v1 }
 0x2e7   :  { %v1289_v48 = vmax.f32 %v1243_v44, 0.0 }
 0x2e9   :  { %v2261_v49 = vsub.f32 %v1273_v23, %v1289_v48  ;;  %v1277_v23 = vmax.f32 %v1213_v52, 0.0 }
 0x2ec   :  { %v1244_v14 = vpop.f32.mrf.mxu1 }
 0x2ed   :  { %v1245_v34 = vadd.f32 %v2226_v61, %v1244_v14 }
 0x2ef   :  { %v1290_v11 = vmax.f32 %v1245_v34, 0.0 }
 0x2f1   :  { %v1306_v54 = vsub.f32 %v1274_v2, %v1290_v11 }
 0x2f4   :  { %v1247_v18 = vpop.f32.mrf.mxu1 }
 0x2f5   :  { %v1248_v21 = vadd.f32 %v2226_v61, %v1247_v18 }
 0x2f7   :  { %v1291_v56 = vmax.f32 %v1248_v21, 0.0 }
 0x2f9   :  { %v1307_v60 = vsub.f32 %v1275_v33, %v1291_v56 }
 0x2fc   :  { %v1249_v63 = vpop.f32.mrf.mxu1 }
 0x2fd   :  { %v1250_v27 = vadd.f32 %v2226_v61, %v1249_v63 }
 0x2ff   :  { %v1292_v0 = vmax.f32 %v1250_v27, 0.0 }
 0x301   :  { %v1308_v7 = vsub.f32 %v1276_v4, %v1292_v0 }
 0x304   :  { %v1252_v10 = vpop.f32.mrf.mxu1 }
 0x305   :  { %v1253_v39 = vadd.f32 %v2226_v61, %v1252_v10 }
 0x307   :  { %v1293_v1 = vmax.f32 %v1253_v39, 0.0 }
 0x309   :  { %v1309_v48 = vsub.f32 %v1277_v23, %v1293_v1 }
 0x30c   :  { %v1254_v12 = vpop.f32.mrf.mxu1 }
 0x30d   :  { %v1255_v31 = vadd.f32 %v2226_v61, %v1254_v12 }
 0x30f   :  { %v1294_v3 = vmax.f32 %v1255_v31, 0.0 }
 0x311   :  { %v1310_v44 = vsub.f32 %v1278_v59, %v1294_v3 }
 0x314   :  { %v1257_v42 = vpop.f32.mrf.mxu1 }
 0x315   :  { %v1258_v30 = vadd.f32 %v2226_v61, %v1257_v42 }
 0x317   :  { %v1295_v36 = vmax.f32 %v1258_v30, 0.0 }
 0x319   :  { %v1311_v40 = vsub.f32 %v1279_v38, %v1295_v36 }
 0x31c   :  { %v1259_v13 = vpop.f32.mrf.mxu1 }
 0x31d   :  { %v1260_v19 = vadd.f32 %v2226_v61, %v1259_v13 }
 0x31f   :  { %v1296_v5 = vmax.f32 %v1260_v19, 0.0 }
 0x321   :  { %v1312_v26 = vsub.f32 %v1280_v29, %v1296_v5 }
 0x324   :  { %v1262_v35 = vpop.f32.mrf.mxu1 }
 0x325   :  { %v1263_v41 = vadd.f32 %v2226_v61, %v1262_v35 }
 0x327   :  { %v1297_v6 = vmax.f32 %v1263_v41, 0.0 }
 0x329   :  { %v1313_v28 = vsub.f32 %v1281_v45, %v1297_v6 }
 0x32c   :  { %v1264_v32 = vpop.f32.mrf.mxu1 }
 0x32d   :  { %v1265_v9 = vadd.f32 %v2226_v61, %v1264_v32 }
 0x32f   :  { %v1298_v57 = vmax.f32 %v1265_v9, 0.0 }
 0x331   :  { %v1314_v53 = vsub.f32 %v1282_v17, %v1298_v57 }
 0x333   :  { %1578 = vmatpush.xpose.msk.msra.mxu2 %vm1316_vm3, %v1314_v53 }
 0x337   :  { %1579 = vmatpush.xpose.msk.msra.mxu2 %vm1316_vm3, %v1313_v28 }
 0x33b   :  { %1580 = vmatpush.xpose.msk.msra.mxu2 %vm1316_vm3, %v1312_v26 }
 0x33f   :  { %1581 = vmatpush.xpose.msk.msra.mxu2 %vm1316_vm3, %v1311_v40 }
 0x343   :  { %1582 = vmatpush.xpose.msk.msra.mxu2 %vm1316_vm3, %v1310_v44 }
 0x347   :  { %1583 = vmatpush.xpose.msk.msra.mxu2 %vm1316_vm3, %v1309_v48 }
 0x34b   :  { %1584 = vmatpush.xpose.msk.msra.mxu2 %vm1316_vm3, %v1308_v7 }
 0x34f   :  { %1585 = vmatpush.xpose.msk.msra.mxu2 %vm1316_vm3, %v1307_v60 }
 0x353   :  { %1586 = vmatpush.xpose.msk.msra.mxu2 %vm1316_vm3, %v1306_v54 }
 0x357   :  { %1587 = vmatpush.xpose.msk.msra.mxu2 %vm1316_vm3, %v2261_v49 }
 0x35b   :  { %1588 = vmatpush.xpose.msk.msra.mxu2 %vm1316_vm3, %v2256_v43 }
 0x35f   :  { %1589 = vmatpush.xpose.msk.msra.mxu2 %vm1316_vm3, %v2251_v37 }
 0x363   :  { %1590 = vmatpush.xpose.msk.msra.mxu2 %vm1316_vm3, %v2246_v51 }
 0x367   :  { %1591 = vmatpush.xpose.msk.msra.mxu2 %vm1316_vm3, %v2241_v16 }
 0x36b   :  { %1592 = vmatpush.xpose.msk.msra.mxu2 %vm1316_vm3, %v2236_v25 }
 0x36f   :  { %1593 = vmatpush.xpose.msk.msra.mxu2 %vm1316_vm3, %v2231_v8 }
 0x372   :  { %1594 = vmatmul.msk.f32.vlgmr.msra.gmra.mxu2 %vm1316_vm3, %v1315_v50 }
 0x3f5   :  { %v1385_v46 = vpop.f32.mrf.mxu2 }
 0x3f6   :  { %v1388_v61 = vmul.f32 %v1385_v46, %v1385_v46 }
 0x3f8   :  { %v1390_v37 = vsel %vm1389_vm4, %v1388_v61, 0.0 }
 0x3f9   :  { %v1391_v51 = vrot.slane %v1390_v37, 4 }
 0x3fb   :  { %v1392_v43 = vadd.f32 %v1391_v51, %v1390_v37 }
 0x3fd   :  { %v1393_v49 = vrot.slane %v1392_v43, 2 }
 0x3ff   :  { %v1394_v16 = vadd.f32 %v1393_v49, %v1392_v43 }
 0x401   :  { %v1395_v8 = vrot.slane %v1394_v16, 1 }
 0x403   :  { %v1396_v25 = vadd.f32 %v1395_v8, %v1394_v16 }
 0x405   :  { %1397 = vst [vmem:[#allocation2] sm:$0x1] %v1396_v25 }
 0x406   :  { %1408 = dma.vmem_to_hbm [thread:$0]  %s1404_s0, 16, %s1406_s23, [#allocation3]  }
 0x407   :  { %1652 = dma.done.wait [#allocation3], 16  }
 0x408   :  { %1653 = vsyncadd [#allocation3], 4294967280 }
 0x409   :  { %1413 = vsyncpa [#allocation3], 1 }

</bundles_post_ra>
